<compile_context>
chip_gen: v7x
topology: tpu7x:2x2x1
jax: 0.10.0
libtpu: 0.0.40
codegen_flags: <defaults>
</compile_context>

<pallas_src>
import functools

import jax
import jax.numpy as jnp
from jax import lax
from jax.experimental import pallas as pl
from jax.experimental.pallas import tpu as pltpu


def _bottleneck_kernel(xt_ref, x_ref, xb_ref,
                       w1_ref, b1_ref, w2_ref, b2_ref, w3_ref, b3_ref,
                       o_ref, h1_ref, *, tile_h, W, dil, n_tiles, pad_l):
    i = pl.program_id(1)                       # H-tile index
    Cin = x_ref.shape[-1]
    P = w1_ref.shape[-1]
    Cout = w3_ref.shape[-1]
    Rp = tile_h + 2 * dil
    Wtot = h1_ref.shape[1]

    x = x_ref[0]                               # (tile_h, W, Cin) bf16, residual too

    # ---- conv1 (1x1, BN scale pre-folded) + shift + relu ------------------
    def conv1(rows):                           # rows: (r, W, Cin) bf16
        r = rows.shape[0]
        h = jnp.dot(rows.reshape(r * W, Cin), w1_ref[...],
                    preferred_element_type=jnp.float32)
        return jnp.maximum(h + b1_ref[...], 0.0)          # (r*W, P) f32

    h1_mid = conv1(x).astype(jnp.bfloat16).reshape(tile_h, W, P)

    # Halo rows: conv1 of the neighbouring tiles' rows. At the image boundary
    # conv2 zero-pads the conv1 *output*, so mask those rows to exact zeros.
    h1_top = conv1(xt_ref[0])
    h1_top = jnp.where(i == 0, 0.0, h1_top)
    h1_top = h1_top.astype(jnp.bfloat16).reshape(dil, W, P)
    h1_bot = conv1(xb_ref[0])
    h1_bot = jnp.where(i == n_tiles - 1, 0.0, h1_bot)
    h1_bot = h1_bot.astype(jnp.bfloat16).reshape(dil, W, P)

    # ---- fill the W-padded bf16 scratch ------------------------------------
    # Left pad = 8 columns so the interior store starts on a sublane boundary;
    # only the thin zero strips are (re)written each step.
    h1_ref[:, 0:pad_l, :] = jnp.zeros((Rp, pad_l, P), jnp.bfloat16)
    h1_ref[:, pad_l + W:, :] = jnp.zeros((Rp, Wtot - pad_l - W, P), jnp.bfloat16)
    h1_ref[0:dil, pad_l:pad_l + W, :] = h1_top
    h1_ref[dil:dil + tile_h, pad_l:pad_l + W, :] = h1_mid
    h1_ref[dil + tile_h:Rp, pad_l:pad_l + W, :] = h1_bot

    # ---- conv2 (3x3, stride 1, dilation=dil) + shift + relu ----------------
    # Concatenate the 3 dx taps along K so each dy step is a single K = 3*P
    # matmul (3 MXU calls per tile, deeper K).
    h1p = h1_ref[...]                                      # (Rp, Wtot, P) bf16
    # TODO(synk): dx=0 / dx=2 tap slices are sublane-unaligned; move to
    # pltpu.roll (XLU) once verified for packed bf16 sublane rotates.
    taps = [h1p[:, pad_l - dil + dx * dil: pad_l - dil + dx * dil + W, :]
            for dx in range(3)]
    h1w = jnp.concatenate(taps, axis=-1)                   # (Rp, W, 3P)
    acc = jnp.zeros((tile_h * W, P), jnp.float32)
    for dy in range(3):
        patch = h1w[dy * dil: dy * dil + tile_h].reshape(tile_h * W, 3 * P)
        acc = acc + jnp.dot(patch, w2_ref[dy],
                            preferred_element_type=jnp.float32)
    h2 = jnp.maximum(acc + b2_ref[...], 0.0)               # (tile_h*W, P) f32

    # ---- conv3 (1x1) + shift + residual + relu (bf16 epilogue) -------------
    h3 = jnp.dot(h2.astype(jnp.bfloat16), w3_ref[...],
                 preferred_element_type=jnp.float32)       # (tile_h*W, Cout) f32
    h3 = (h3 + b3_ref[...]).astype(jnp.bfloat16).reshape(tile_h, W, Cout)
    out = jnp.maximum(h3 + x, 0)                           # bf16 residual add + relu
    o_ref[0] = out.astype(o_ref.dtype)


def _pick_tile_h(H, dil, target=16):
    """Largest tile_h <= target with dil | tile_h and tile_h | H; fallback H."""
    for t in range(min(target, H), 0, -1):
        if H % t == 0 and t % dil == 0:
            return t
    return H


def bottleneck_forward(x_nchw, params, stride=1, dilation=1, downsample=None,
                       tile_h=None):
    if stride != 1 or downsample is not None:
        raise NotImplementedError(
            "Only the module defaults (stride=1, downsample=None) are "
            "implemented by this Pallas kernel.")
    dil = int(dilation)
    N, Cin, H, W = x_nchw.shape
    P = params['w1'].shape[1]
    Cout = params['w3'].shape[1]
    assert Cin == Cout, "downsample=None requires inplanes == planes*4"
    assert 1 <= dil <= 8, "dilation must be in [1, 8]"

    if tile_h is None:
        tile_h = _pick_tile_h(H, dil)
    if H % tile_h != 0 or (H // tile_h > 1 and tile_h % dil != 0):
        raise ValueError("tile_h must divide H and be a multiple of dilation")
    n_tiles = H // tile_h
    pad_l = 8
    Wtot = pad_l + W + 8
    Rp = tile_h + 2 * dil
    r = max(tile_h // dil, 1)                  # dil-row blocks per tile
    n_hblk = (H + dil - 1) // dil              # dil-row blocks along H

    # Fold BN scales into conv output channels; keep only the shifts.
    w1 = (params['w1'] * params['s1']).astype(jnp.bfloat16)        # (Cin, P)
    w2 = params['w2'] * params['s2']                               # (3,3,P,P) HWIO
    w2cat = jnp.concatenate([w2[:, dx] for dx in range(3)],
                            axis=1).astype(jnp.bfloat16)           # (3, 3P, P)
    w3 = (params['w3'] * params['s3']).astype(jnp.bfloat16)        # (P, Cout)
    b1 = params['b1'].reshape(1, P).astype(jnp.float32)
    b2 = params['b2'].reshape(1, P).astype(jnp.float32)
    b3 = params['b3'].reshape(1, Cout).astype(jnp.float32)

    # NHWC bf16, *unpadded* (conv2 pads the conv1 output, not x).
    x_nhwc = jnp.transpose(x_nchw, (0, 2, 3, 1)).astype(jnp.bfloat16)

    def _const_spec(shape):
        nd = len(shape)
        return pl.BlockSpec(shape, lambda n, i, _nd=nd: (0,) * _nd)

    # Halo index maps: previous tile's last dil rows / next tile's first dil
    # rows, clamped at the image boundary (the kernel masks those to zero).
    top_map = lambda n, i: (n, jnp.clip(i * r - 1, 0, n_hblk - 1), 0, 0)
    bot_map = lambda n, i: (n, jnp.clip((i + 1) * r, 0, n_hblk - 1), 0, 0)

    kernel = functools.partial(_bottleneck_kernel, tile_h=tile_h, W=W, dil=dil,
                               n_tiles=n_tiles, pad_l=pad_l)

    # Per-generation VMEM budget (v5e/v6e: ~96 MiB of 128; v7x: ~48 of 64).
    try:
        cap = getattr(pltpu.get_tpu_info(), "vmem_capacity_bytes",
                      64 * 1024 * 1024)
    except Exception:
        cap = 64 * 1024 * 1024
    vmem_limit = int(min(cap * 3 // 4, 100 * 1024 * 1024))

    flops = 2 * N * H * W * (Cin * P + 9 * P * P + P * Cout)
    bytes_accessed = int(
        N * (H + n_tiles * 2 * dil) * W * Cin * 2          # x (+ halo rereads)
        + N * H * W * Cout * 2                             # bf16 output
        + (w1.size + w2cat.size + w3.size) * 2
        + (b1.size + b2.size + b3.size) * 4)

    out_nhwc = pl.pallas_call(
        kernel,
        out_shape=jax.ShapeDtypeStruct((N, H, W, Cout), jnp.bfloat16),
        grid=(N, n_tiles),
        in_specs=[
            pl.BlockSpec((1, dil, W, Cin), top_map),            # top halo rows
            pl.BlockSpec((1, tile_h, W, Cin), lambda n, i: (n, i, 0, 0)),
            pl.BlockSpec((1, dil, W, Cin), bot_map),            # bottom halo rows
            _const_spec((Cin, P)), _const_spec((1, P)),
            _const_spec((3, 3 * P, P)), _const_spec((1, P)),
            _const_spec((P, Cout)), _const_spec((1, Cout)),
        ],
        out_specs=pl.BlockSpec((1, tile_h, W, Cout), lambda n, i: (n, i, 0, 0)),
        scratch_shapes=[pltpu.VMEM((Rp, Wtot, P), jnp.bfloat16)],
        compiler_params=pltpu.CompilerParams(
            dimension_semantics=("parallel", "parallel"),
            vmem_limit_bytes=vmem_limit),
        cost_estimate=pl.CostEstimate(
            flops=flops, transcendentals=0, bytes_accessed=bytes_accessed),
    )(x_nhwc, x_nhwc, x_nhwc, w1, b1, w2cat, b2, w3, b3)

    return jnp.transpose(out_nhwc, (0, 3, 1, 2))


def init_params(key, inplanes, planes):
    """Deterministic synthetic params. Conv weights stored as:
       w1: (Cin, P), w2: (kh, kw, P, P) [HWIO], w3: (P, 4P).
       BN folded into per-channel scale s and shift b (eval mode, eps=1e-5)."""
    expansion = 4
    ks = jax.random.split(key, 6)
    w1 = 0.1 * jax.random.normal(ks[0], (inplanes, planes), jnp.float32)
    w2 = 0.1 * jax.random.normal(ks[1], (3, 3, planes, planes), jnp.float32)
    w3 = 0.1 * jax.random.normal(ks[2], (planes, planes * expansion), jnp.float32)

    def bn(k, c):
        kg, kb, km, kv = jax.random.split(k, 4)
        gamma = 1.0 + 0.1 * jax.random.normal(kg, (c,), jnp.float32)
        beta = 0.1 * jax.random.normal(kb, (c,), jnp.float32)
        mean = 0.1 * jax.random.normal(km, (c,), jnp.float32)
        var = jax.nn.softplus(jax.random.normal(kv, (c,), jnp.float32)) + 0.5
        eps = 1e-5
        scale = gamma / jnp.sqrt(var + eps)
        shift = beta - mean * scale
        return scale, shift

    s1, b1 = bn(ks[3], planes)
    s2, b2 = bn(ks[4], planes)
    s3, b3 = bn(ks[5], planes * expansion)
    return dict(w1=w1, w2=w2, w3=w3, s1=s1, b1=b1, s2=s2, b2=b2, s3=s3, b3=b3)


def reference(x_nchw, p, dilation=1):
    """Pure-JAX f32 reference (same folded-BN eval semantics) for validation."""
    x = jnp.transpose(x_nchw, (0, 2, 3, 1)).astype(jnp.float32)
    h = jnp.einsum('nhwc,cp->nhwp', x, p['w1'])
    h = jnp.maximum(h * p['s1'] + p['b1'], 0.0)
    h = lax.conv_general_dilated(
        h, p['w2'], window_strides=(1, 1),
        padding=[(dilation, dilation), (dilation, dilation)],
        rhs_dilation=(dilation, dilation),
        dimension_numbers=('NHWC', 'HWIO', 'NHWC'))
    h = jnp.maximum(h * p['s2'] + p['b2'], 0.0)
    h = jnp.einsum('nhwc,cp->nhwp', h, p['w3']) * p['s3'] + p['b3']
    out = jnp.maximum(h + x, 0.0)
    return jnp.transpose(out, (0, 3, 1, 2))


if __name__ == "__main__":
    key = jax.random.PRNGKey(0)
    kx, kp = jax.random.split(key)

    # Small correctness config: batch=2, inplanes=16, planes=4 (planes*4 ==
    # inplanes so the downsample=None residual is valid), spatial 16x16.
    # NOTE: this is a smoke test only -- perf tuning must be done at real
    # channel counts (Cin/Cout multiples of 128, P >= 128, spatial >= 64).
    inplanes, planes, H, W, N = 16, 4, 16, 16, 2
    x = jax.random.normal(kx, (N, inplanes, H, W), jnp.float32)
    params = init_params(kp, inplanes, planes)

    configs = [
        dict(dilation=1, tile_h=None),   # single H-tile (halos fully masked)
        dict(dilation=1, tile_h=8),      # two H-tiles, dil=1 halo exchange
        dict(dilation=2, tile_h=8),      # two H-tiles, dil=2 halo exchange
    ]
    for cfg in configs:
        out = bottleneck_forward(x, params, dilation=cfg["dilation"],
                                 tile_h=cfg["tile_h"])
        out = jax.block_until_ready(out)
        ref = reference(x, params, dilation=cfg["dilation"])
        assert out.shape == ref.shape == (N, planes * 4, H, W)
        out_f32 = out.astype(jnp.float32)
        # bf16 MXU inputs and bf16 output storage -> bf16-level tolerance.
        if not jnp.allclose(out_f32, ref, atol=3e-2, rtol=3e-2):
            max_err = jnp.max(jnp.abs(out_f32 - ref))
            raise AssertionError(
                f"Pallas kernel mismatch for {cfg}: max abs err {max_err}")
    print("KERNEL_OK")
</pallas_src>

<mosaic_0001>
module attributes {stable_mosaic.version = 11 : i64} {
  func.func @_bottleneck_kernel(%arg0: i32, %arg1: i32, %arg2: memref<1x1x16x16xbf16, #tpu.memory_space<vmem>>, %arg3: memref<1x16x16x16xbf16, #tpu.memory_space<vmem>>, %arg4: memref<1x1x16x16xbf16, #tpu.memory_space<vmem>>, %arg5: memref<16x4xbf16, #tpu.memory_space<vmem>>, %arg6: memref<1x4xf32, #tpu.memory_space<vmem>>, %arg7: memref<3x12x4xbf16, #tpu.memory_space<vmem>>, %arg8: memref<1x4xf32, #tpu.memory_space<vmem>>, %arg9: memref<4x16xbf16, #tpu.memory_space<vmem>>, %arg10: memref<1x16xf32, #tpu.memory_space<vmem>>, %arg11: memref<1x16x16x16xbf16, #tpu.memory_space<vmem>>, %arg12: memref<18x32x4xbf16, #tpu.memory_space<vmem>>) attributes {dimension_semantics = [#tpu.dimension_semantics<parallel>, #tpu.dimension_semantics<parallel>], iteration_bounds = array<i64: 2, 1>, scalar_prefetch = 0 : i64, scratch_operands = 1 : i64, tpu.core_type = #tpu.core_type<tc>, window_params = [{transform_indices = @transform_0, window_bounds = array<i64: 1, 1, 16, 16>}, {transform_indices = @transform_1, window_bounds = array<i64: 1, 16, 16, 16>}, {transform_indices = @transform_2, window_bounds = array<i64: 1, 1, 16, 16>}, {pipeline_mode = #tpu.pipeline_mode<synchronous>, transform_indices = @transform_3, window_bounds = array<i64: 16, 4>}, {pipeline_mode = #tpu.pipeline_mode<synchronous>, transform_indices = @transform_4, window_bounds = array<i64: 1, 4>}, {pipeline_mode = #tpu.pipeline_mode<synchronous>, transform_indices = @transform_5, window_bounds = array<i64: 3, 12, 4>}, {pipeline_mode = #tpu.pipeline_mode<synchronous>, transform_indices = @transform_6, window_bounds = array<i64: 1, 4>}, {pipeline_mode = #tpu.pipeline_mode<synchronous>, transform_indices = @transform_7, window_bounds = array<i64: 4, 16>}, {pipeline_mode = #tpu.pipeline_mode<synchronous>, transform_indices = @transform_8, window_bounds = array<i64: 1, 16>}, {transform_indices = @transform_9, window_bounds = array<i64: 1, 16, 16, 16>}]} {
    %c0 = arith.constant 0 : index
    %c0_0 = arith.constant 0 : index
    %c0_1 = arith.constant 0 : index
    %c0_2 = arith.constant 0 : index
    %0 = vector.load %arg3[%c0, %c0_0, %c0_1, %c0_2] : memref<1x16x16x16xbf16, #tpu.memory_space<vmem>>, vector<1x16x16x16xbf16>
    %1 = vector.shape_cast %0 : vector<1x16x16x16xbf16> to vector<16x16x16xbf16>
    %2 = vector.shape_cast %1 : vector<16x16x16xbf16> to vector<256x16xbf16>
    %c0_3 = arith.constant 0 : index
    %c0_4 = arith.constant 0 : index
    %3 = vector.load %arg5[%c0_3, %c0_4] : memref<16x4xbf16, #tpu.memory_space<vmem>>, vector<16x4xbf16>
    %cst = arith.constant dense<0.000000e+00> : vector<256x4xf32>
    %4 = tpu.matmul %2, %3, %cst {dimension_numbers = #tpu.dot_dimension_numbers<[1], [0], [0], [1], [0, 0, 1, 1], [], []>} : vector<256x16xbf16>, vector<16x4xbf16>, vector<256x4xf32> -> vector<256x4xf32>
    %c0_5 = arith.constant 0 : index
    %c0_6 = arith.constant 0 : index
    %5 = vector.load %arg6[%c0_5, %c0_6] : memref<1x4xf32, #tpu.memory_space<vmem>>, vector<1x4xf32>
    %6 = vector.broadcast %5 : vector<1x4xf32> to vector<256x4xf32>
    %7 = arith.addf %4, %6 : vector<256x4xf32>
    %cst_7 = arith.constant 0.000000e+00 : f32
    %8 = vector.broadcast %cst_7 : f32 to vector<256x4xf32>
    %9 = arith.maximumf %7, %8 : vector<256x4xf32>
    %10 = arith.truncf %9 : vector<256x4xf32> to vector<256x4xbf16>
    %11 = vector.shape_cast %10 : vector<256x4xbf16> to vector<16x16x4xbf16>
    %c0_8 = arith.constant 0 : index
    %c0_9 = arith.constant 0 : index
    %c0_10 = arith.constant 0 : index
    %c0_11 = arith.constant 0 : index
    %12 = vector.load %arg2[%c0_8, %c0_9, %c0_10, %c0_11] : memref<1x1x16x16xbf16, #tpu.memory_space<vmem>>, vector<1x1x16x16xbf16>
    %13 = vector.shape_cast %12 : vector<1x1x16x16xbf16> to vector<1x16x16xbf16>
    %14 = vector.shape_cast %13 : vector<1x16x16xbf16> to vector<16x16xbf16>
    %c0_12 = arith.constant 0 : index
    %c0_13 = arith.constant 0 : index
    %15 = vector.load %arg5[%c0_12, %c0_13] : memref<16x4xbf16, #tpu.memory_space<vmem>>, vector<16x4xbf16>
    %cst_14 = arith.constant dense<0.000000e+00> : vector<16x4xf32>
    %16 = tpu.matmul %14, %15, %cst_14 {dimension_numbers = #tpu.dot_dimension_numbers<[1], [0], [0], [1], [0, 0, 1, 1], [], []>} : vector<16x16xbf16>, vector<16x4xbf16>, vector<16x4xf32> -> vector<16x4xf32>
    %c0_15 = arith.constant 0 : index
    %c0_16 = arith.constant 0 : index
    %17 = vector.load %arg6[%c0_15, %c0_16] : memref<1x4xf32, #tpu.memory_space<vmem>>, vector<1x4xf32>
    %18 = vector.broadcast %17 : vector<1x4xf32> to vector<16x4xf32>
    %19 = arith.addf %16, %18 : vector<16x4xf32>
    %cst_17 = arith.constant 0.000000e+00 : f32
    %20 = vector.broadcast %cst_17 : f32 to vector<16x4xf32>
    %21 = arith.maximumf %19, %20 : vector<16x4xf32>
    %c0_i32 = arith.constant 0 : i32
    %22 = arith.cmpi eq, %arg1, %c0_i32 : i32
    %cst_18 = arith.constant 0.000000e+00 : f32
    %23 = vector.broadcast %cst_18 : f32 to vector<16x4xf32>
    %24 = arith.select %22, %23, %21 : vector<16x4xf32>
    %25 = arith.truncf %24 : vector<16x4xf32> to vector<16x4xbf16>
    %26 = vector.shape_cast %25 : vector<16x4xbf16> to vector<1x16x4xbf16>
    %c0_19 = arith.constant 0 : index
    %c0_20 = arith.constant 0 : index
    %c0_21 = arith.constant 0 : index
    %c0_22 = arith.constant 0 : index
    %27 = vector.load %arg4[%c0_19, %c0_20, %c0_21, %c0_22] : memref<1x1x16x16xbf16, #tpu.memory_space<vmem>>, vector<1x1x16x16xbf16>
    %28 = vector.shape_cast %27 : vector<1x1x16x16xbf16> to vector<1x16x16xbf16>
    %29 = vector.shape_cast %28 : vector<1x16x16xbf16> to vector<16x16xbf16>
    %c0_23 = arith.constant 0 : index
    %c0_24 = arith.constant 0 : index
    %30 = vector.load %arg5[%c0_23, %c0_24] : memref<16x4xbf16, #tpu.memory_space<vmem>>, vector<16x4xbf16>
    %cst_25 = arith.constant dense<0.000000e+00> : vector<16x4xf32>
    %31 = tpu.matmul %29, %30, %cst_25 {dimension_numbers = #tpu.dot_dimension_numbers<[1], [0], [0], [1], [0, 0, 1, 1], [], []>} : vector<16x16xbf16>, vector<16x4xbf16>, vector<16x4xf32> -> vector<16x4xf32>
    %c0_26 = arith.constant 0 : index
    %c0_27 = arith.constant 0 : index
    %32 = vector.load %arg6[%c0_26, %c0_27] : memref<1x4xf32, #tpu.memory_space<vmem>>, vector<1x4xf32>
    %33 = vector.broadcast %32 : vector<1x4xf32> to vector<16x4xf32>
    %34 = arith.addf %31, %33 : vector<16x4xf32>
    %cst_28 = arith.constant 0.000000e+00 : f32
    %35 = vector.broadcast %cst_28 : f32 to vector<16x4xf32>
    %36 = arith.maximumf %34, %35 : vector<16x4xf32>
    %c0_i32_29 = arith.constant 0 : i32
    %37 = arith.cmpi eq, %arg1, %c0_i32_29 : i32
    %cst_30 = arith.constant 0.000000e+00 : f32
    %38 = vector.broadcast %cst_30 : f32 to vector<16x4xf32>
    %39 = arith.select %37, %38, %36 : vector<16x4xf32>
    %40 = arith.truncf %39 : vector<16x4xf32> to vector<16x4xbf16>
    %41 = vector.shape_cast %40 : vector<16x4xbf16> to vector<1x16x4xbf16>
    %cst_31 = arith.constant 0.000000e+00 : bf16
    %42 = vector.broadcast %cst_31 : bf16 to vector<18x8x4xbf16>
    %c0_32 = arith.constant 0 : index
    %c0_33 = arith.constant 0 : index
    %c0_34 = arith.constant 0 : index
    %43 = vector.load %arg12[%c0_32, %c0_33, %c0_34] : memref<18x32x4xbf16, #tpu.memory_space<vmem>>, vector<18x8x4xbf16>
    tpu.vector_store %arg12[%c0_32, %c0_33, %c0_34], %42 {strides = array<i32>} : memref<18x32x4xbf16, #tpu.memory_space<vmem>>, vector<18x8x4xbf16>,
    %cst_35 = arith.constant 0.000000e+00 : bf16
    %44 = vector.broadcast %cst_35 : bf16 to vector<18x8x4xbf16>
    %c0_36 = arith.constant 0 : index
    %c24 = arith.constant 24 : index
    %c0_37 = arith.constant 0 : index
    %45 = vector.load %arg12[%c0_36, %c24, %c0_37] : memref<18x32x4xbf16, #tpu.memory_space<vmem>>, vector<18x8x4xbf16>
    tpu.vector_store %arg12[%c0_36, %c24, %c0_37], %44 {strides = array<i32>} : memref<18x32x4xbf16, #tpu.memory_space<vmem>>, vector<18x8x4xbf16>,
    %c0_38 = arith.constant 0 : index
    %c8 = arith.constant 8 : index
    %c0_39 = arith.constant 0 : index
    %46 = vector.load %arg12[%c0_38, %c8, %c0_39] : memref<18x32x4xbf16, #tpu.memory_space<vmem>>, vector<1x16x4xbf16>
    tpu.vector_store %arg12[%c0_38, %c8, %c0_39], %26 {strides = array<i32>} : memref<18x32x4xbf16, #tpu.memory_space<vmem>>, vector<1x16x4xbf16>,
    %c1 = arith.constant 1 : index
    %c8_40 = arith.constant 8 : index
    %c0_41 = arith.constant 0 : index
    %47 = vector.load %arg12[%c1, %c8_40, %c0_41] : memref<18x32x4xbf16, #tpu.memory_space<vmem>>, vector<16x16x4xbf16>
    tpu.vector_store %arg12[%c1, %c8_40, %c0_41], %11 {strides = array<i32>} : memref<18x32x4xbf16, #tpu.memory_space<vmem>>, vector<16x16x4xbf16>,
    %c17 = arith.constant 17 : index
    %c8_42 = arith.constant 8 : index
    %c0_43 = arith.constant 0 : index
    %48 = vector.load %arg12[%c17, %c8_42, %c0_43] : memref<18x32x4xbf16, #tpu.memory_space<vmem>>, vector<1x16x4xbf16>
    tpu.vector_store %arg12[%c17, %c8_42, %c0_43], %41 {strides = array<i32>} : memref<18x32x4xbf16, #tpu.memory_space<vmem>>, vector<1x16x4xbf16>,
    %c0_44 = arith.constant 0 : index
    %c0_45 = arith.constant 0 : index
    %c0_46 = arith.constant 0 : index
    %49 = vector.load %arg12[%c0_44, %c0_45, %c0_46] : memref<18x32x4xbf16, #tpu.memory_space<vmem>>, vector<18x32x4xbf16>
    %50 = vector.extract_strided_slice %49 {offsets = [0, 7, 0], sizes = [18, 16, 4], strides = [1, 1, 1]} : vector<18x32x4xbf16> to vector<18x16x4xbf16>
    %51 = vector.extract_strided_slice %49 {offsets = [0, 8, 0], sizes = [18, 16, 4], strides = [1, 1, 1]} : vector<18x32x4xbf16> to vector<18x16x4xbf16>
    %52 = vector.extract_strided_slice %49 {offsets = [0, 9, 0], sizes = [18, 16, 4], strides = [1, 1, 1]} : vector<18x32x4xbf16> to vector<18x16x4xbf16>
    %53 = tpu.concatenate %50, %51, %52 in 2 : vector<18x16x4xbf16>, vector<18x16x4xbf16>, vector<18x16x4xbf16> -> vector<18x16x12xbf16>
    %cst_47 = arith.constant 0.000000e+00 : f32
    %54 = vector.broadcast %cst_47 : f32 to vector<256x4xf32>
    %55 = vector.extract_strided_slice %53 {offsets = [0, 0, 0], sizes = [16, 16, 12], strides = [1, 1, 1]} : vector<18x16x12xbf16> to vector<16x16x12xbf16>
    %56 = vector.shape_cast %55 : vector<16x16x12xbf16> to vector<256x12xbf16>
    %c0_48 = arith.constant 0 : index
    %c0_49 = arith.constant 0 : index
    %c0_50 = arith.constant 0 : index
    %57 = vector.load %arg7[%c0_48, %c0_49, %c0_50] : memref<3x12x4xbf16, #tpu.memory_space<vmem>>, vector<1x12x4xbf16>
    %58 = vector.shape_cast %57 : vector<1x12x4xbf16> to vector<12x4xbf16>
    %cst_51 = arith.constant dense<0.000000e+00> : vector<256x4xf32>
    %59 = tpu.matmul %56, %58, %cst_51 {dimension_numbers = #tpu.dot_dimension_numbers<[1], [0], [0], [1], [0, 0, 1, 1], [], []>} : vector<256x12xbf16>, vector<12x4xbf16>, vector<256x4xf32> -> vector<256x4xf32>
    %60 = arith.addf %54, %59 : vector<256x4xf32>
    %61 = vector.extract_strided_slice %53 {offsets = [1, 0, 0], sizes = [16, 16, 12], strides = [1, 1, 1]} : vector<18x16x12xbf16> to vector<16x16x12xbf16>
    %62 = vector.shape_cast %61 : vector<16x16x12xbf16> to vector<256x12xbf16>
    %c1_52 = arith.constant 1 : index
    %c0_53 = arith.constant 0 : index
    %c0_54 = arith.constant 0 : index
    %63 = vector.load %arg7[%c1_52, %c0_53, %c0_54] : memref<3x12x4xbf16, #tpu.memory_space<vmem>>, vector<1x12x4xbf16>
    %64 = vector.shape_cast %63 : vector<1x12x4xbf16> to vector<12x4xbf16>
    %cst_55 = arith.constant dense<0.000000e+00> : vector<256x4xf32>
    %65 = tpu.matmul %62, %64, %cst_55 {dimension_numbers = #tpu.dot_dimension_numbers<[1], [0], [0], [1], [0, 0, 1, 1], [], []>} : vector<256x12xbf16>, vector<12x4xbf16>, vector<256x4xf32> -> vector<256x4xf32>
    %66 = arith.addf %60, %65 : vector<256x4xf32>
    %67 = vector.extract_strided_slice %53 {offsets = [2, 0, 0], sizes = [16, 16, 12], strides = [1, 1, 1]} : vector<18x16x12xbf16> to vector<16x16x12xbf16>
    %68 = vector.shape_cast %67 : vector<16x16x12xbf16> to vector<256x12xbf16>
    %c2 = arith.constant 2 : index
    %c0_56 = arith.constant 0 : index
    %c0_57 = arith.constant 0 : index
    %69 = vector.load %arg7[%c2, %c0_56, %c0_57] : memref<3x12x4xbf16, #tpu.memory_space<vmem>>, vector<1x12x4xbf16>
    %70 = vector.shape_cast %69 : vector<1x12x4xbf16> to vector<12x4xbf16>
    %cst_58 = arith.constant dense<0.000000e+00> : vector<256x4xf32>
    %71 = tpu.matmul %68, %70, %cst_58 {dimension_numbers = #tpu.dot_dimension_numbers<[1], [0], [0], [1], [0, 0, 1, 1], [], []>} : vector<256x12xbf16>, vector<12x4xbf16>, vector<256x4xf32> -> vector<256x4xf32>
    %72 = arith.addf %66, %71 : vector<256x4xf32>
    %c0_59 = arith.constant 0 : index
    %c0_60 = arith.constant 0 : index
    %73 = vector.load %arg8[%c0_59, %c0_60] : memref<1x4xf32, #tpu.memory_space<vmem>>, vector<1x4xf32>
    %74 = vector.broadcast %73 : vector<1x4xf32> to vector<256x4xf32>
    %75 = arith.addf %72, %74 : vector<256x4xf32>
    %cst_61 = arith.constant 0.000000e+00 : f32
    %76 = vector.broadcast %cst_61 : f32 to vector<256x4xf32>
    %77 = arith.maximumf %75, %76 : vector<256x4xf32>
    %78 = arith.truncf %77 : vector<256x4xf32> to vector<256x4xbf16>
    %c0_62 = arith.constant 0 : index
    %c0_63 = arith.constant 0 : index
    %79 = vector.load %arg9[%c0_62, %c0_63] : memref<4x16xbf16, #tpu.memory_space<vmem>>, vector<4x16xbf16>
    %cst_64 = arith.constant dense<0.000000e+00> : vector<256x16xf32>
    %80 = tpu.matmul %78, %79, %cst_64 {dimension_numbers = #tpu.dot_dimension_numbers<[1], [0], [0], [1], [0, 0, 1, 1], [], []>} : vector<256x4xbf16>, vector<4x16xbf16>, vector<256x16xf32> -> vector<256x16xf32>
    %c0_65 = arith.constant 0 : index
    %c0_66 = arith.constant 0 : index
    %81 = vector.load %arg10[%c0_65, %c0_66] : memref<1x16xf32, #tpu.memory_space<vmem>>, vector<1x16xf32>
    %82 = vector.broadcast %81 : vector<1x16xf32> to vector<256x16xf32>
    %83 = arith.addf %80, %82 : vector<256x16xf32>
    %84 = arith.truncf %83 : vector<256x16xf32> to vector<256x16xbf16>
    %85 = vector.shape_cast %84 : vector<256x16xbf16> to vector<16x16x16xbf16>
    %86 = arith.addf %85, %1 : vector<16x16x16xbf16>
    %cst_67 = arith.constant 0.000000e+00 : bf16
    %87 = vector.broadcast %cst_67 : bf16 to vector<16x16x16xbf16>
    %88 = arith.maximumf %86, %87 : vector<16x16x16xbf16>
    %c0_68 = arith.constant 0 : index
    %c0_69 = arith.constant 0 : index
    %c0_70 = arith.constant 0 : index
    %c0_71 = arith.constant 0 : index
    %89 = vector.load %arg11[%c0_68, %c0_69, %c0_70, %c0_71] : memref<1x16x16x16xbf16, #tpu.memory_space<vmem>>, vector<1x16x16x16xbf16>
    %90 = vector.shape_cast %89 : vector<1x16x16x16xbf16> to vector<16x16x16xbf16>
    %91 = vector.shape_cast %88 : vector<16x16x16xbf16> to vector<1x16x16x16xbf16>
    tpu.vector_store %arg11[%c0_68, %c0_69, %c0_70, %c0_71], %91 {strides = array<i32>} : memref<1x16x16x16xbf16, #tpu.memory_space<vmem>>, vector<1x16x16x16xbf16>,
    return
  }
  func.func @transform_0(%arg0: i32, %arg1: i32) -> (i32, i32, i32, i32) {
    %c16_i32 = arith.constant 16 : i32
    %0 = arith.muli %arg1, %c16_i32 : i32
    %c1_i32 = arith.constant 1 : i32
    %1 = arith.subi %0, %c1_i32 : i32
    %c0_i32 = arith.constant 0 : i32
    %c15_i32 = arith.constant 15 : i32
    %2 = arith.maxsi %c0_i32, %1 : i32
    %3 = arith.minsi %c15_i32, %2 : i32
    %c0_i32_0 = arith.constant 0 : i32
    %c0_i32_1 = arith.constant 0 : i32
    %c0_i32_2 = arith.constant 0 : i32
    return %arg0, %3, %c0_i32_0, %c0_i32_1 : i32, i32, i32, i32
  }
  func.func @transform_1(%arg0: i32, %arg1: i32) -> (i32, i32, i32, i32) {
    %c0_i32 = arith.constant 0 : i32
    %c0_i32_0 = arith.constant 0 : i32
    %c0_i32_1 = arith.constant 0 : i32
    return %arg0, %arg1, %c0_i32, %c0_i32_0 : i32, i32, i32, i32
  }
  func.func @transform_2(%arg0: i32, %arg1: i32) -> (i32, i32, i32, i32) {
    %c1_i32 = arith.constant 1 : i32
    %0 = arith.addi %arg1, %c1_i32 : i32
    %c16_i32 = arith.constant 16 : i32
    %1 = arith.muli %0, %c16_i32 : i32
    %c0_i32 = arith.constant 0 : i32
    %c15_i32 = arith.constant 15 : i32
    %2 = arith.maxsi %c0_i32, %1 : i32
    %3 = arith.minsi %c15_i32, %2 : i32
    %c0_i32_0 = arith.constant 0 : i32
    %c0_i32_1 = arith.constant 0 : i32
    %c0_i32_2 = arith.constant 0 : i32
    return %arg0, %3, %c0_i32_0, %c0_i32_1 : i32, i32, i32, i32
  }
  func.func @transform_3(%arg0: i32, %arg1: i32) -> (i32, i32) {
    %c0_i32 = arith.constant 0 : i32
    %c0_i32_0 = arith.constant 0 : i32
    %c0_i32_1 = arith.constant 0 : i32
    return %c0_i32, %c0_i32_0 : i32, i32
  }
  func.func @transform_4(%arg0: i32, %arg1: i32) -> (i32, i32) {
    %c0_i32 = arith.constant 0 : i32
    %c0_i32_0 = arith.constant 0 : i32
    %c0_i32_1 = arith.constant 0 : i32
    return %c0_i32, %c0_i32_0 : i32, i32
  }
  func.func @transform_5(%arg0: i32, %arg1: i32) -> (i32, i32, i32) {
    %c0_i32 = arith.constant 0 : i32
    %c0_i32_0 = arith.constant 0 : i32
    %c0_i32_1 = arith.constant 0 : i32
    %c0_i32_2 = arith.constant 0 : i32
    return %c0_i32, %c0_i32_0, %c0_i32_1 : i32, i32, i32
  }
  func.func @transform_6(%arg0: i32, %arg1: i32) -> (i32, i32) {
    %c0_i32 = arith.constant 0 : i32
    %c0_i32_0 = arith.constant 0 : i32
    %c0_i32_1 = arith.constant 0 : i32
    return %c0_i32, %c0_i32_0 : i32, i32
  }
  func.func @transform_7(%arg0: i32, %arg1: i32) -> (i32, i32) {
    %c0_i32 = arith.constant 0 : i32
    %c0_i32_0 = arith.constant 0 : i32
    %c0_i32_1 = arith.constant 0 : i32
    return %c0_i32, %c0_i32_0 : i32, i32
  }
  func.func @transform_8(%arg0: i32, %arg1: i32) -> (i32, i32) {
    %c0_i32 = arith.constant 0 : i32
    %c0_i32_0 = arith.constant 0 : i32
    %c0_i32_1 = arith.constant 0 : i32
    return %c0_i32, %c0_i32_0 : i32, i32
  }
  func.func @transform_9(%arg0: i32, %arg1: i32) -> (i32, i32, i32, i32) {
    %c0_i32 = arith.constant 0 : i32
    %c0_i32_0 = arith.constant 0 : i32
    %c0_i32_1 = arith.constant 0 : i32
    return %arg0, %arg1, %c0_i32, %c0_i32_0 : i32, i32, i32, i32
  }
}

</mosaic_0001>

<bundles_post_ra>
// kernel: tpu_custom_call.1
= control target key start
LH: loop header
LB: loop body
LE: loop exit
PB: predicated region body
PF: predicated region fallthrough
CT: control target
= control target key end

     0   :  { %s5496_s0 = inlined_call_operand.hbm [shape: bf16[2,16,16,16], index: 0, kind: input, shape index: {}]   ;;  %s5497_s1 = inlined_call_operand.hbm [shape: bf16[2,16,16,16], index: 1, kind: input, shape index: {}]   ;;  %s5498_s2 = inlined_call_operand.hbm [shape: bf16[2,16,16,16], index: 2, kind: input, shape index: {}]   ;;  %s5499_s3 = inlined_call_operand.vmem [shape: bf16[16,4], index: 3, kind: input, shape index: {}]   ;;  %s5500_s4 = inlined_call_operand.vmem [shape: f32[1,4], index: 4, kind: input, shape index: {}]   ;;  %s5501_s5 = inlined_call_operand.vmem [shape: bf16[3,12,4], index: 5, kind: input, shape index: {}]   ;;  %s5502_s6 = inlined_call_operand.vmem [shape: f32[1,4], index: 6, kind: input, shape index: {}]   ;;  %s5503_s7 = inlined_call_operand.vmem [shape: bf16[4,16], index: 7, kind: input, shape index: {}]   ;;  %s5504_s8 = inlined_call_operand.vmem [shape: f32[1,16], index: 8, kind: input, shape index: {}]   ;;  %s5505_s9 = inlined_call_operand.hbm [shape: bf16[2,16,16,16], index: 9, kind: output, shape index: {}]  }
   0x1   :  { %5522 = sst [smem:[#allocation21_spill]] %s5497_s1 }
   0x2   :  { %5523 = sst [smem:[#allocation22_spill]] %s5505_s9 }
   0x3   :  { %14 = vsyncpa [#allocation4], 0 }
   0x4   :  { %16 = vsyncpa [#allocation4 + $0x1], 0 }
   0x5   :  { %17 = vsyncpa [#allocation7], 0 }
   0x6   :  { %19 = vsyncpa [#allocation7 + $0x1], 0 }
   0x7   :  { %20 = vsyncpa [#allocation5], 0 }
   0x8   :  { %22 = vsyncpa [#allocation5 + $0x1], 0  ;;  %s4245_s30 = smov 0   ;;  %s4247_s10 = smov 0  }
   0x9   :  { %s4249_s11 = smov 0   ;;  %s4251_s12 = smov 0  }
   0xa   :  { %s4253_s13 = smov 0   ;;  %s4255_s14 = smov 0  }
   0xb LB: > { %5524 = sst [smem:[#allocation13_spill]] %s4160_s30  ;;  %s4276_s15 = sadd.s32 4294967295, %s4180_s14   ;;  %s4180_s14 = sphi %s4255_s14, %s28_s14   ;;  %s4176_s13 = sphi %s4253_s13, %s5558_s13   ;;  %s4172_s12 = sphi %s4251_s12, %s5557_s12   ;;  %s4168_s11 = sphi %s4249_s11, %s5556_s11   ;;  %s4164_s10 = sphi %s4247_s10, %s5560_s10   ;;  %s4160_s30 = sphi %s4245_s30, %s5559_s30  }
   0xc   : > { %5525 = sst [smem:[#allocation14_spill]] %s4168_s11  ;;  %s3370_s16 = sadd.s32 4294967294, %s4180_s14  }
   0xd   : > { %5526 = sst [smem:[#allocation15_spill]] %s4176_s13  ;;  %s40_s17 = sadd.s32 1, %s4176_s13 }
   0xe   : > { %5527 = sst [smem:[#allocation16_spill]] %s4180_s14  ;;  %s61_s18 = sadd.s32 1, %s4168_s11 }
   0xf   : > { %p42_p0 = scmp.ge.s32.totalorder %s40_s17, 2  ;;  %p68_p1 = scmp.ne.s32.totalorder %s4168_s11, %s4164_s10 }
  0x10   : > { %p69_p2 = scmp.eq.s32.totalorder %s4180_s14, 0  ;;  %p74_p3 = scmp.ne.s32.totalorder %s4164_s10, %s4160_s30 }
  0x11   : > { %s5562_s17 = smov (%p42_p0, %s40_s17), 0  ;;  %p75_p5 = scmp.eq.s32.totalorder %s4276_s15, 0 }
  0x12   : > { %5528 = sst [smem:[#allocation17_spill]] %s5562_s17  ;;  %p4288_p4 = por %p69_p2, %p68_p1 }
  0x13   : > { %s56_s20 = ssub.s32 %s4176_s13, %s5562_s17  ;;  %p294_p6 = scmp.eq.s32.totalorder %s4276_s15, 1 }
  0x14   : > { %p59_p7 = scmp.eq.s32.totalorder %s56_s20, 0  ;;  %p4296_p8 = por %p75_p5, %p74_p3 }
  0x15   : > { %p4300_p9 = por %p294_p6, %p68_p1  ;;  %p300_p10 = scmp.eq.s32.totalorder %s3370_s16, 1 }
  0x16   : > { %s5530_s21 = scalar_select %p4296_p8, 1, 0 }
  0x17   : > { %s5531_s22 = scalar_select %p4300_p9, 1, 0 }
  0x18   : > { %s4305_s23 = scalar_select %p59_p7, %s4168_s11, %s61_s18  }
  0x19   : > { %5532 = sst [smem:[#allocation18_spill]] %s5531_s22  ;;  %p4307_p11 = por %p300_p10, %p74_p3 }
  0x1a   : > { %5533 = sst [smem:[#allocation19_spill]] %s4305_s23  ;;  %p3905_p13 = scmp.lt.s32.totalorder %s4180_s14, 2 }
  0x1b   : > { %s5534_s24 = scalar_select %p4307_p11, 1, 0 }
  0x1c   : > { %s4314_s25 = sand.u32 1, %s4168_s11   ;;  %s4317_s26 = sshll.u32 %s4176_s13, 11 }
  0x1d   : > { %5535 = sst [smem:[#allocation20_spill]] %s5534_s24  ;;  %p4321_p0 = pnand %p3905_p13, %p4288_p4 }
  0x1e   : > { %s367_s28 = sand.u32 1, %s4180_s14   ;;  %s3376_s29 = sshll.u32 %s4314_s25, 7 }
  0x1f   : > { %s5537_s1 = sld [smem:[#allocation21_spill]]  ;;  %s371_s17 = scalar_lea.vmem [#allocation6], %s3376_s29 }
  0x20   : > { %s381_s13 = sshll.u32 %s371_s17, 4  ;;  %s4337_s19 = scalar_lea.sflag [#allocation7], %s367_s28  ;;  %s4334_s13 = int_to_ptr.vmem [resolvable:$true] %s381_s13 }
  0x21   : > { %p4343_p4 = pneg %p4321_p0 }
  0x25   : > { %s4331_s20 = scalar_lea.hbm %s5537_s1, %s4317_s26  ;;  %s4009_s17 = scalar_lea.hbm %s5537_s1, 4096 }
  0x26   : > { %s4004_s23 = scalar_lea.hbm %s4331_s20, 2048  ;;  %p4010_p7 = scmp.lt.u32.totalorder %s4331_s20, %s5537_s1 }
  0x27   : > { %p4005_p3 = scmp.ne.s32.totalorder %s4331_s20, %s4004_s23  ;;  %p4011_p10 = scmp.lt.u32.totalorder %s4009_s17, %s4004_s23 }
  0x28   : > { %p4013_p12 = scmp.lt.u32.totalorder %s4004_s23, %s4331_s20 }
  0x29   : > { %p4007_p5 = pnand %p4343_p4, %p4005_p3  ;;  %p4012_p13 = por %p4011_p10, %p4010_p7 }
  0x2b   : > { %p4008_p6 = pneg %p4007_p5  ;;  %p4014_p1 = por %p4013_p12, %p4012_p13 }
  0x2d   : > { %p4015_p2 = pnand %p4014_p1, %p4008_p6 }
  0x2f   : > { %4018 = shalt.err (!%p4015_p2)
}
  0x30   : > { %s4019_s28 = scalar_lea.vmem %s4334_s13, 2048  ;;  %s4182_s16 = smov [#allocation6]  }
  0x31   : > { %p4020_p3 = scmp.ne.s32.totalorder %s4334_s13, %s4019_s28  ;;  %s4024_s29 = sshll.u32 %s4182_s16, 4  ;;  %s4025_s29 = int_to_ptr.vmem [resolvable:$false] %s4024_s29 }
  0x32   : > { %s4026_s24 = scalar_lea.vmem %s4025_s29, 4096  ;;  %p4027_p9 = scmp.lt.s32.totalorder %s4334_s13, %s4025_s29 }
  0x33   : > { %p4022_p5 = pnand %p4020_p3, %p4343_p4  ;;  %p4028_p8 = scmp.lt.s32.totalorder %s4026_s24, %s4019_s28 }
  0x35   : > { %p4023_p11 = pneg %p4022_p5  ;;  %p4029_p7 = por %p4028_p8, %p4027_p9 }
  0x37   : > { %p4030_p10 = pnand %p4029_p7, %p4023_p11 }
  0x39   : > { %4033 = shalt.err (!%p4030_p10)
}
  0x3a   : > { %s5514_s23 = smov 64   ;;  %s5516_s17 = smov 4  }
  0x3b   : > { %3897 = dma.hbm_to_vmem [thread:$0]  (!%p4321_p0), %s4331_s20, 2048, %s4334_s13, %s4337_s19, %s5514_s23, %s5514_s23, %s5516_s17  }
  0x3c   : > { %p5539_p8 = scmp.lt.s32.totalorder %s4180_s14, 3  ;;  %p5540_p9 = scmp.ge.s32.totalorder %s4180_s14, 1 }
  0x3d   : > { %s3373_s28 = sshll.u32 %s4314_s25, 3  ;;  %s4383_s24 = scalar_lea.hbm %s5496_s0, %s4317_s26 }
  0x3e   : > { %p4374_p11 = pnand %p5540_p9, %p5539_p8  ;;  %s342_s1 = scalar_lea.vmem [#allocation3], %s3373_s28 }
  0x3f   : > { %s357_s30 = sshll.u32 %s342_s1, 4  ;;  %s395_s9 = scalar_lea.vmem [#allocation8], %s3373_s28  ;;  %s4385_s30 = int_to_ptr.vmem [resolvable:$true] %s357_s30 }
  0x40   : > { %s5541_s18 = scalar_select %p4374_p11, 1, 0 }
  0x41   : > { %s410_s13 = sshll.u32 %s395_s9, 4  ;;  %s339_s20 = scalar_lea.sflag [#allocation4], %s4314_s25  ;;  %s4387_s13 = int_to_ptr.vmem [resolvable:$true] %s410_s13 }
  0x42   : > { %s4034_s23 = scalar_lea.hbm %s4383_s24, 128  ;;  %s4039_s17 = scalar_lea.hbm %s5496_s0, 4096 }
  0x43   : > { %p4035_p12 = scmp.ne.s32.totalorder %s4383_s24, %s4034_s23  ;;  %p4040_p6 = scmp.lt.u32.totalorder %s4383_s24, %s5496_s0 }
  0x44   : > { %p4041_p13 = scmp.lt.u32.totalorder %s4039_s17, %s4034_s23  ;;  %p4043_p5 = scmp.lt.u32.totalorder %s4034_s23, %s4383_s24 }
  0x45   : > { %p4037_p1 = pnand %p4035_p12, %p4343_p4 }
  0x46   : > { %p4042_p3 = por %p4041_p13, %p4040_p6 }
  0x47   : > { %p4038_p2 = pneg %p4037_p1 }
  0x48   : > { %p4044_p7 = por %p4043_p5, %p4042_p3 }
  0x4a   : > { %p4045_p10 = pnand %p4044_p7, %p4038_p2 }
  0x4c   : > { %4048 = shalt.err (!%p4045_p10)
}
  0x4d   : > { %s4049_s1 = scalar_lea.vmem %s4385_s30, 128  ;;  %s4185_s9 = smov [#allocation3]  }
  0x4e   : > { %p4050_p8 = scmp.ne.s32.totalorder %s4385_s30, %s4049_s1  ;;  %s4054_s28 = sshll.u32 %s4185_s9, 4  ;;  %s4055_s28 = int_to_ptr.vmem [resolvable:$false] %s4054_s28 }
  0x4f   : > { %s4056_s14 = scalar_lea.vmem %s4055_s28, 256  ;;  %p4057_p1 = scmp.lt.s32.totalorder %s4385_s30, %s4055_s28 }
  0x50   : > { %p4052_p9 = pnand %p4050_p8, %p4343_p4  ;;  %p4058_p11 = scmp.lt.s32.totalorder %s4056_s14, %s4049_s1 }
  0x52   : > { %p4053_p12 = pneg %p4052_p9  ;;  %p4059_p6 = por %p4058_p11, %p4057_p1 }
  0x54   : > { %p4060_p13 = pnand %p4059_p6, %p4053_p12 }
  0x56   : > { %4063 = shalt.err (!%p4060_p13)
}
  0x57   : > { %s5542_s22 = smov 4   ;;  %s5543_s23 = smov 64  }
  0x58   : > { %3894 = dma.hbm_to_vmem [thread:$0]  (!%p4321_p0), %s4383_s24, 128, %s4385_s30, %s339_s20, %s5543_s23, %s5543_s23, %s5542_s22  }
  0x59   : > { %s3538_s17 = sadd.s32 1920, %s4317_s26  ;;  %s4069_s14 = scalar_lea.hbm %s5498_s2, 4096 }
  0x5a   : > { %s4420_s1 = scalar_lea.hbm %s5498_s2, %s3538_s17 }
  0x5b   : > { %s4064_s9 = scalar_lea.hbm %s4420_s1, 128  ;;  %p4070_p5 = scmp.lt.u32.totalorder %s4420_s1, %s5498_s2 }
  0x5c   : > { %p4065_p11 = scmp.ne.s32.totalorder %s4420_s1, %s4064_s9  ;;  %p4071_p7 = scmp.lt.u32.totalorder %s4069_s14, %s4064_s9 }
  0x5d   : > { %p4073_p8 = scmp.lt.u32.totalorder %s4064_s9, %s4420_s1 }
  0x5e   : > { %p4067_p2 = pnand %p4065_p11, %p4343_p4  ;;  %p4072_p10 = por %p4071_p7, %p4070_p5 }
  0x60   : > { %p4068_p3 = pneg %p4067_p2  ;;  %p4074_p9 = por %p4073_p8, %p4072_p10 }
  0x62   : > { %p4075_p12 = pnand %p4074_p9, %p4068_p3 }
  0x64   : > { %4078 = shalt.err (!%p4075_p12)
}
  0x65   : > { %s4079_s24 = scalar_lea.vmem %s4387_s13, 128  ;;  %s4186_s20 = smov [#allocation8]  }
  0x66   : > { %p4080_p1 = scmp.ne.s32.totalorder %s4387_s13, %s4079_s24  ;;  %s4084_s17 = sshll.u32 %s4186_s20, 4  ;;  %s4085_s17 = int_to_ptr.vmem [resolvable:$false] %s4084_s17 }
  0x67   : > { %s4086_s16 = scalar_lea.vmem %s4085_s17, 256  ;;  %p4087_p11 = scmp.lt.s32.totalorder %s4387_s13, %s4085_s17 }
  0x68   : > { %p4082_p6 = pnand %p4080_p1, %p4343_p4  ;;  %p4088_p2 = scmp.lt.s32.totalorder %s4086_s16, %s4079_s24 }
  0x6a   : > { %p4083_p13 = pneg %p4082_p6  ;;  %p4089_p5 = por %p4088_p2, %p4087_p11 }
  0x6c   : > { %p4090_p7 = pnand %p4089_p5, %p4083_p13 }
  0x6e   : > { %4093 = shalt.err (!%p4090_p7)
}
  0x6f   : > { %3900 = dma.hbm_to_vmem [thread:$0]  (!%p4321_p0), %s4420_s1, 128, %s4387_s13, %s4337_s19, %s5543_s23, %s5543_s23, %s5542_s22  }
  0x70   : > { %p5544_p4 = scmp.ne.s32.totalorder %s5541_s18, 0 }
  0x71   : > { %s4450_s11 = sand.u32 (!%p5544_p4), 1, %s4164_s10   ;;  %p5545_p3 = scmp.ne.s32.totalorder (!%p5544_p4), %s5530_s21, 0 }
  0x72   : > { %422 = sbr.rel (%p5544_p4) target bundleno = 1168 (0x490), region = 56  ;;  %s3383_s29 = sshll.u32 (!%p5544_p4), %s4450_s11, 3 }
  0x73   : > { %s425_s9 = scalar_lea.sflag (!%p5544_p4), [#allocation4], %s4450_s11  ;;  %s4456_s27 = scalar_lea.vmem (!%p5544_p4), [#allocation3], %s3383_s29 }
  0x79   : > { %4147 = dma.done.wait (%p5545_p3), %s425_s9, 128  }
  0x7a   : > { %4149 = vsyncadd (%p5545_p3), %s425_s9, 4294967168  ;;  %s433_s19 = sand.u32 1, %s4276_s15   ;;  %s3384_s18 = sshll.u32 %s4450_s11, 7 }
  0x7b   : > { %s434_s13 = scalar_lea.sflag [#allocation7], %s433_s19  ;;  %s4466_s22 = scalar_lea.vmem [#allocation6], %s3384_s18 }
  0x7c   : > { %4151 = dma.done.wait (%p5545_p3), %s434_s13, 2176  }
  0x7d   : > { %4153 = vsyncadd (%p5545_p3), %s434_s13, 4294965120  ;;  %v4475_v0 = vld [vmem:[%s5499_s3] sm:$0xff]   ;;  %vm633_vm0 = vcmask 130048   ;;  %v3965_v1 = vld [vmem:[%s4466_s22] sm:$0xff]   ;;  %v4187_v17 = vmov 0.0|0.0   ;;  %vm1007_vm1 = vcmask 27648  }
  0x7e   : > { %3630 = vmatprep.subr.bf16.mxu0 %v4475_v0  ;;  %v3966_v2 = vld [vmem:[%s4466_s22 + $0x8] sm:$0xff]   ;;  %3632 = vmatprep.mubr.msk.bf16.mxu0 %vm633_vm0, %v3965_v1  ;;  %v3967_v3 = vld [vmem:[%s4466_s22 + $0x10] sm:$0xff]   ;;  %v3968_v4 = vld [vmem:[%s4466_s22 + $0x18] sm:$0xff]   ;;  %v1046_v18 = vrot.slane %v4187_v17, 4  ;;  %vm1026_vm2 = vcmask 31748   ;;  %v4188_v19 = vmov 0  }
  0x7f   : > { %3631 = vmatpush3.bf16.msra.mxu0 %v4475_v0  ;;  %v3969_v5 = vld [vmem:[%s4466_s22 + $0x20] sm:$0xff]   ;;  %v3970_v6 = vld [vmem:[%s4466_s22 + $0x28] sm:$0xff]   ;;  %v3971_v7 = vld [vmem:[%s4466_s22 + $0x30] sm:$0xff]   ;;  %1027 = vst.msk [vmem:[#allocation2 + $0x8] sm:$0xf0] %vm1026_vm2, %v4188_v19  ;;  %vm1552_vm3 = vcmask 1046528  }
  0x80   : > { %v3972_v8 = vld [vmem:[%s4466_s22 + $0x38] sm:$0xff]   ;;  %v3973_v9 = vld [vmem:[%s4466_s22 + $0x40] sm:$0xff]   ;;  %v3974_v10 = vld [vmem:[%s4466_s22 + $0x48] sm:$0xff]   ;;  %1049 = vst.msk [vmem:[#allocation2 + $0x8] sm:$0xf] %vm1007_vm1, %v1046_v18  ;;  %s4189_s15 = smov 8  }
  0x81   : > { %v3975_v11 = vld [vmem:[%s4466_s22 + $0x50] sm:$0xff]   ;;  %v3976_v12 = vld [vmem:[%s4466_s22 + $0x58] sm:$0xff]   ;;  %v3977_v13 = vld [vmem:[%s4466_s22 + $0x60] sm:$0xff]   ;;  %1008 = vst.msk [vmem:[#allocation2] sm:$0xf] %vm1007_vm1, %v4188_v19  ;;  %s4190_s21 = smov 4  }
  0x82   : > { %3633 = vmatmul.mubr.msk.bf16.vlgmr.msra.gmra.mrb[0].mxu0 %vm633_vm0, %v3966_v2  ;;  %v3978_v14 = vld [vmem:[%s4466_s22 + $0x68] sm:$0xff]   ;;  %v3979_v15 = vld [vmem:[%s4466_s22 + $0x70] sm:$0xff]   ;;  %v3980_v16 = vld [vmem:[%s4466_s22 + $0x78] sm:$0xff]   ;;  %1009 = vst.msk [vmem:[#allocation2 + $0x10] sm:$0xf] %vm1007_vm1, %v4188_v19  ;;  %vm1679_vm5 = vcmask 31744  }
  0x83   : > { %3636 = vmatprep.mubr.msk.bf16.mxu0 %vm633_vm0, %v3967_v3  ;;  %1010 = vst.msk [vmem:[#allocation2 + $0x20] sm:$0xf] %vm1007_vm1, %v4188_v19  ;;  %1011 = vst.msk [vmem:[#allocation2 + $0x30] sm:$0xf] %vm1007_vm1, %v4188_v19  ;;  %vm1173_vm4 = vsmask.f32 7424 }
  0x84   : > { %1012 = vst.msk [vmem:[#allocation2 + $0x40] sm:$0xf] %vm1007_vm1, %v4188_v19  ;;  %1013 = vst.msk [vmem:[#allocation2 + $0x50] sm:$0xf] %vm1007_vm1, %v4188_v19  ;;  %v4606_v34 = vld [vmem:[%s5500_s4] ss:$0 sm:$0xff] }
  0x85   : > { %1014 = vst.msk [vmem:[#allocation2 + $0x60] sm:$0xf] %vm1007_vm1, %v4188_v19  ;;  %1015 = vst.msk [vmem:[#allocation2 + $0x70] sm:$0xf] %vm1007_vm1, %v4188_v19  ;;  %vm1752_vm6 = vcmask 64512   ;;  %s4761_s14 = scalar_lea.vmem [#allocation8], %s3383_s29 }
  0x86   : > { %1016 = vst.msk [vmem:[#allocation2 + $0x80] sm:$0xf] %vm1007_vm1, %v4188_v19  ;;  %1017 = vst.msk [vmem:[#allocation2 + $0x90] sm:$0xf] %vm1007_vm1, %v4188_v19  ;;  %vm2140_vm7 = vcmask 1045504   ;;  %vm4192_vm9 = vmmov 0  }
  0x87   : > { %1018 = vst.msk [vmem:[#allocation2 + $0xa0] sm:$0xf] %vm1007_vm1, %v4188_v19  ;;  %1019 = vst.msk [vmem:[#allocation2 + $0xb0] sm:$0xf] %vm1007_vm1, %v4188_v19  ;;  %v4587_v20 = vld [vmem:[#allocation2 + $0x8] sm:$0xff]  ;;  %vm2091_vm10 = vcmask 97280  }
  0x88   : > { %1020 = vst.msk [vmem:[#allocation2 + $0xc0] sm:$0xf] %vm1007_vm1, %v4188_v19  ;;  %1021 = vst.msk [vmem:[#allocation2 + $0xd0] sm:$0xf] %vm1007_vm1, %v4188_v19  ;;  %v1554_v22 = vrot.slane %v4587_v20, 1  ;;  %v1182_v24 = vshll.u32 %v4587_v20, 16 }
  0x89   : > { %1022 = vst.msk [vmem:[#allocation2 + $0xe0] sm:$0xf] %vm1007_vm1, %v4188_v19  ;;  %1023 = vst.msk [vmem:[#allocation2 + $0xf0] sm:$0xf] %vm1007_vm1, %v4188_v19  ;;  %v1186_v28 = vshrl.u32 %v4587_v20, 16  ;;  %vm2842_vm11 = vcmask 1041408  }
  0x8a   : > { %3637 = vmatmul.mubr.msk.bf16.gmra.mrb[4].mxu0 %vm633_vm0, %v3968_v4  ;;  %1024 = vst.msk [vmem:[#allocation2 + $0x100] sm:$0xf] %vm1007_vm1, %v4188_v19  ;;  %1025 = vst.msk [vmem:[#allocation2 + $0x110] sm:$0xf] %vm1007_vm1, %v4188_v19  ;;  %1609 = vrot.lane.b32.xlu1 %v1554_v22, %s4189_s15  ;;  %v1184_v27 = vrot.slane %v1182_v24, 1  ;;  %vm3183_vm12 = vcmask 125952  }
  0x8b   : > { %3640 = vmatprep.mubr.msk.bf16.mxu0 %vm633_vm0, %v3969_v5  ;;  %1028 = vst.msk [vmem:[#allocation2 + $0x18] sm:$0xf0] %vm1026_vm2, %v4188_v19  ;;  %1029 = vst.msk [vmem:[#allocation2 + $0x28] sm:$0xf0] %vm1026_vm2, %v4188_v19  ;;  %vm1825_vm8 = vsmask.f32 4352 }
  0x8c   : > { %1030 = vst.msk [vmem:[#allocation2 + $0x38] sm:$0xf0] %vm1026_vm2, %v4188_v19  ;;  %1031 = vst.msk [vmem:[#allocation2 + $0x48] sm:$0xf0] %vm1026_vm2, %v4188_v19  ;;  %v1188_v31 = vor.u32 %v1186_v28, %v1184_v27  ;;  %s5321_s1 = scalar_lea.vmem [#allocation9], %s3384_s18  ;;  %s3539_s18 = sshll.u32 %s4172_s12, 11 }
  0x8d   : > { %1032 = vst.msk [vmem:[#allocation2 + $0x58] sm:$0xf0] %vm1026_vm2, %v4188_v19  ;;  %1033 = vst.msk [vmem:[#allocation2 + $0x68] sm:$0xf0] %vm1026_vm2, %v4188_v19  ;;  %s3233_s25 = sshll.u32 %s5321_s1, 4  ;;  %s5547_s30 = sld [smem:[#allocation22_spill]]  ;;  %s5438_s25 = int_to_ptr.vmem [resolvable:$true] %s3233_s25 }
  0x8e   : > { %1034 = vst.msk [vmem:[#allocation2 + $0x78] sm:$0xf0] %vm1026_vm2, %v4188_v19  ;;  %1035 = vst.msk [vmem:[#allocation2 + $0x88] sm:$0xf0] %vm1026_vm2, %v4188_v19  ;;  %1446 = vrot.lane.b32.xlu1 %v1188_v31, %s4190_s21  ;;  %s3217_s12 = scalar_lea.sflag [#allocation5], %s4450_s11  ;;  %s4193_s20 = smov [#allocation9]  }
  0x8f   : > { %1036 = vst.msk [vmem:[#allocation2 + $0x98] sm:$0xf0] %vm1026_vm2, %v4188_v19  ;;  %1037 = vst.msk [vmem:[#allocation2 + $0xa8] sm:$0xf0] %vm1026_vm2, %v4188_v19  ;;  %s4098_s17 = sshll.u32 %s4193_s20, 4  ;;  %s4099_s17 = int_to_ptr.vmem [resolvable:$false] %s4098_s17 }
  0x90   : > { %1038 = vst.msk [vmem:[#allocation2 + $0xb8] sm:$0xf0] %vm1026_vm2, %v4188_v19  ;;  %1039 = vst.msk [vmem:[#allocation2 + $0xc8] sm:$0xf0] %vm1026_vm2, %v4188_v19  ;;  %s4100_s16 = scalar_lea.vmem %s4099_s17, 4096  ;;  %p4101_p12 = scmp.lt.s32.totalorder %s5438_s25, %s4099_s17 }
  0x91   : > { %1040 = vst.msk [vmem:[#allocation2 + $0xd8] sm:$0xf0] %vm1026_vm2, %v4188_v19  ;;  %1041 = vst.msk [vmem:[#allocation2 + $0xe8] sm:$0xf0] %vm1026_vm2, %v4188_v19 }
  0x92   : > { %3641 = vmatmul.mubr.msk.bf16.gmra.mrb[8].mxu0 %vm633_vm0, %v3970_v6  ;;  %1042 = vst.msk [vmem:[#allocation2 + $0xf8] sm:$0xf0] %vm1026_vm2, %v4188_v19  ;;  %1043 = vst.msk [vmem:[#allocation2 + $0x108] sm:$0xf0] %vm1026_vm2, %v4188_v19 }
  0x93   : > { %3644 = vmatprep.mubr.msk.bf16.mxu0 %vm633_vm0, %v3971_v7  ;;  %1044 = vst.msk [vmem:[#allocation2 + $0x118] sm:$0xf0] %vm1026_vm2, %v4188_v19  ;;  %1048 = vst.msk [vmem:[#allocation2] sm:$0xf0] %vm1026_vm2, %v1046_v18  ;;  %s5548_s26 = smov %s5547_s30  ;;  %s5436_s24 = scalar_lea.hbm %s5547_s30, %s3539_s18 }
  0x94   : > { %1135 = vst.msk [vmem:[#allocation2 + $0x110] sm:$0xf0] %vm1026_vm2, %v1046_v18 }
  0x95   : > { %1136 = vst.msk [vmem:[#allocation2 + $0x118] sm:$0xf] %vm1007_vm1, %v1046_v18 }
  0x9a   : > { %3645 = vmatmul.mubr.msk.bf16.gmra.mrb[12].mxu0 %vm633_vm0, %v3972_v8  ;;  %v4589_v21 = vld [vmem:[#allocation2] sm:$0xff] }
  0x9b   : > { %3648 = vmatprep.mubr.msk.bf16.mxu0 %vm633_vm0, %v3973_v9  ;;  %v1553_v23 = vrot.slane %v4589_v21, 1  ;;  %v1177_v25 = vshll.u32 %v4589_v21, 16  ;;  %v1175_v29 = vshrl.u32 %v4589_v21, 16 }
  0x9d   : > { %v1555_v26 = vsel %vm1552_vm3, %v1553_v23, %v1554_v22  ;;  %v1179_v30 = vrot.slane %v1177_v25, 1 }
  0x9e   : > { %1607 = vrot.lane.b32.xlu0 %v1555_v26, %s4189_s15 }
  0x9f   : > { %v1180_v32 = vor.u32 %v1179_v30, %v1175_v29 }
  0xa1   : > { %v1185_v33 = vsel %vm1173_vm4, %v1180_v32, %v1184_v27 }
  0xa2   : > { %3649 = vmatmul.mubr.msk.bf16.gmra.mrb[16].mxu0 %vm633_vm0, %v3974_v10  ;;  %1444 = vrot.lane.b32.xlu0 %v1185_v33, %s4190_s21 }
  0xa3   : > { %3652 = vmatprep.mubr.msk.bf16.mxu0 %vm633_vm0, %v3975_v11 }
  0xaa   : > { %3653 = vmatmul.mubr.msk.bf16.gmra.mrb[20].mxu0 %vm633_vm0, %v3976_v12 }
  0xab   : > { %3656 = vmatprep.mubr.msk.bf16.mxu0 %vm633_vm0, %v3977_v13 }
  0xb2   : > { %3657 = vmatmul.mubr.msk.bf16.gmra.mrb[24].mxu0 %vm633_vm0, %v3978_v14 }
  0xb3   : > { %3660 = vmatprep.mubr.msk.bf16.mxu0 %vm633_vm0, %v3979_v15 }
  0xba   : > { %3661 = vmatmul.mubr.msk.bf16.gmra.mrb[28].mxu0 %vm633_vm0, %v3980_v16 }
 0x155   : > { %v3634_v35 = vpop.f32.mrb[0].mxu0 }
 0x156   : > { %v725_v36 = vadd.f32 %v3634_v35, %v4606_v34  ;;  %v716_v37 = vpop.f32.mrb[1].mxu0 }
 0x157   : > { %v717_v38 = vadd.f32 %v4606_v34, %v716_v37  ;;  %v3635_v39 = vpop.f32.mrb[2].mxu0 }
 0x158   : > { %v728_v40 = vadd.f32 %v3635_v39, %v4606_v34  ;;  %v719_v41 = vpop.f32.mrb[3].mxu0  ;;  %v845_v43 = vmax.f32 %v725_v36, 0.0 }
 0x159   : > { %v720_v42 = vadd.f32 %v4606_v34, %v719_v41  ;;  %v843_v45 = vmax.f32 %v717_v38, 0.0 }
 0x15a   : > { %v846_v44 = vmax.f32 %v728_v40, 0.0 }
 0x15b   : > { %v844_v46 = vmax.f32 %v720_v42, 0.0 }
 0x15c   : > { %v876_v47 = vpack.c.bf16 %v846_v44, %v845_v43 }
 0x15d   : > { %v875_v48 = vpack.c.bf16 %v844_v46, %v843_v45  ;;  %v3638_v49 = vpop.f32.mrb[4].mxu0 }
 0x15e   : > { %v1067_v50 = vrot.slane %v876_v47, 4  ;;  %v741_v51 = vadd.f32 %v3638_v49, %v4606_v34  ;;  %v732_v52 = vpop.f32.mrb[5].mxu0 }
 0x15f   : > { %v1066_v53 = vrot.slane %v875_v48, 4  ;;  %v733_v54 = vadd.f32 %v4606_v34, %v732_v52  ;;  %v3639_v55 = vpop.f32.mrb[6].mxu0 }
 0x160   : > { %1101 = vst.msk [vmem:[#allocation2 + $0x20] sm:$0xf0] %vm1026_vm2, %v1067_v50  ;;  %v744_v56 = vadd.f32 %v3639_v55, %v4606_v34  ;;  %v735_v57 = vpop.f32.mrb[7].mxu0  ;;  %v849_v59 = vmax.f32 %v741_v51, 0.0 }
 0x161   : > { %1102 = vst.msk [vmem:[#allocation2 + $0x28] sm:$0xf] %vm1007_vm1, %v1067_v50  ;;  %1100 = vst.msk [vmem:[#allocation2 + $0x18] sm:$0xf] %vm1007_vm1, %v1066_v53  ;;  %v736_v58 = vadd.f32 %v4606_v34, %v735_v57  ;;  %v847_v61 = vmax.f32 %v733_v54, 0.0 }
 0x162   : > { %1099 = vst.msk [vmem:[#allocation2 + $0x10] sm:$0xf0] %vm1026_vm2, %v1066_v53  ;;  %v850_v60 = vmax.f32 %v744_v56, 0.0 }
 0x163   : > { %v848_v62 = vmax.f32 %v736_v58, 0.0 }
 0x164   : > { %v878_v63 = vpack.c.bf16 %v850_v60, %v849_v59 }
 0x165   : > { %v877_v1 = vpack.c.bf16 %v848_v62, %v847_v61  ;;  %v3642_v2 = vpop.f32.mrb[8].mxu0 }
 0x166   : > { %v1069_v3 = vrot.slane %v878_v63, 4  ;;  %v757_v4 = vadd.f32 %v3642_v2, %v4606_v34  ;;  %v748_v5 = vpop.f32.mrb[9].mxu0 }
 0x167   : > { %v1068_v6 = vrot.slane %v877_v1, 4  ;;  %v749_v7 = vadd.f32 %v4606_v34, %v748_v5  ;;  %v3643_v8 = vpop.f32.mrb[10].mxu0  ;;  %v4624_v10 = vld [vmem:[#allocation2 + $0x20] sm:$0xff] }
 0x168   : > { %v4622_v9 = vld [vmem:[#allocation2 + $0x28] sm:$0xff]  ;;  %1105 = vst.msk [vmem:[#allocation2 + $0x40] sm:$0xf0] %vm1026_vm2, %v1069_v3  ;;  %v760_v11 = vadd.f32 %v3643_v8, %v4606_v34  ;;  %v751_v12 = vpop.f32.mrb[11].mxu0  ;;  %v1559_v14 = vrot.slane %v4624_v10, 1  ;;  %v4631_v15 = vld [vmem:[#allocation2 + $0x18] sm:$0xff] }
 0x169   : > { %1106 = vst.msk [vmem:[#allocation2 + $0x48] sm:$0xf] %vm1007_vm1, %v1069_v3  ;;  %v1560_v13 = vrot.slane %v4622_v9, 1  ;;  %v4633_v16 = vld [vmem:[#allocation2 + $0x10] sm:$0xff]  ;;  %1104 = vst.msk [vmem:[#allocation2 + $0x38] sm:$0xf] %vm1007_vm1, %v1068_v6  ;;  %v752_v18 = vadd.f32 %v4606_v34, %v751_v12 }
 0x16a   : > { %1103 = vst.msk [vmem:[#allocation2 + $0x30] sm:$0xf0] %vm1026_vm2, %v1068_v6  ;;  %v853_v17 = vmax.f32 %v757_v4, 0.0  ;;  %v1557_v22 = vrot.slane %v4631_v15, 1  ;;  %v854_v23 = vmax.f32 %v760_v11, 0.0  ;;  %v1556_v25 = vrot.slane %v4633_v16, 1 }
 0x16b   : > { %1617 = vrot.lane.b32.xlu1 %v1560_v13, %s4189_s15  ;;  %v1561_v24 = vsel %vm1552_vm3, %v1559_v14, %v1560_v13  ;;  %v1212_v26 = vshll.u32 %v4622_v9, 16  ;;  %v851_v27 = vmax.f32 %v749_v7, 0.0  ;;  %v852_v28 = vmax.f32 %v752_v18, 0.0 }
 0x16c   : > { %1615 = vrot.lane.b32.xlu0 %v1561_v24, %s4189_s15  ;;  %v1207_v29 = vshll.u32 %v4624_v10, 16  ;;  %v880_v30 = vpack.c.bf16 %v854_v23, %v853_v17  ;;  %v1197_v32 = vshll.u32 %v4631_v15, 16  ;;  %v1205_v36 = vshrl.u32 %v4624_v10, 16 }
 0x16d   : > { %v1214_v31 = vrot.slane %v1212_v26, 1  ;;  %v879_v33 = vpack.c.bf16 %v852_v28, %v851_v27  ;;  %v3646_v35 = vpop.f32.mrb[12].mxu0  ;;  %v1192_v38 = vshll.u32 %v4633_v16, 16  ;;  %v1558_v42 = vsel %vm1552_vm3, %v1556_v25, %v1557_v22 }
 0x16e   : > { %v1209_v37 = vrot.slane %v1207_v29, 1  ;;  %v1071_v39 = vrot.slane %v880_v30, 4  ;;  %v773_v40 = vadd.f32 %v3646_v35, %v4606_v34  ;;  %v764_v41 = vpop.f32.mrb[13].mxu0  ;;  %v1216_v43 = vshrl.u32 %v4622_v9, 16 }
 0x16f   : > { %1613 = vrot.lane.b32.xlu1 %v1557_v22, %s4189_s15  ;;  %v1070_v44 = vrot.slane %v879_v33, 4  ;;  %v765_v45 = vadd.f32 %v4606_v34, %v764_v41  ;;  %v3647_v46 = vpop.f32.mrb[14].mxu0  ;;  %v1194_v48 = vrot.slane %v1192_v38, 1  ;;  %v1199_v52 = vrot.slane %v1197_v32, 1  ;;  %v4664_v57 = vld [vmem:[#allocation2 + $0x40] sm:$0xff] }
 0x170   : > { %1611 = vrot.lane.b32.xlu0 %v1558_v42, %s4189_s15  ;;  %v1210_v47 = vor.u32 %v1209_v37, %v1205_v36  ;;  %1109 = vst.msk [vmem:[#allocation2 + $0x60] sm:$0xf0] %vm1026_vm2, %v1071_v39  ;;  %v776_v49 = vadd.f32 %v3647_v46, %v4606_v34  ;;  %v767_v50 = vpop.f32.mrb[15].mxu0  ;;  %v1218_v51 = vor.u32 %v1216_v43, %v1214_v31  ;;  %v1190_v53 = vshrl.u32 %v4633_v16, 16  ;;  %v4662_v56 = vld [vmem:[#allocation2 + $0x48] sm:$0xff]  ;;  %v4668_v62 = vld [vmem:[#allocation2 + $0x38] sm:$0xff] }
 0x171   : > { %1110 = vst.msk [vmem:[#allocation2 + $0x68] sm:$0xf] %vm1007_vm1, %v1071_v39  ;;  %1108 = vst.msk [vmem:[#allocation2 + $0x58] sm:$0xf] %vm1007_vm1, %v1070_v44  ;;  %v768_v54 = vadd.f32 %v4606_v34, %v767_v50  ;;  %v1201_v55 = vshrl.u32 %v4631_v15, 16  ;;  %v857_v58 = vmax.f32 %v773_v40, 0.0 }
 0x172   : > { %1107 = vst.msk [vmem:[#allocation2 + $0x50] sm:$0xf0] %vm1026_vm2, %v1070_v44  ;;  %v858_v59 = vmax.f32 %v776_v49, 0.0  ;;  %v1215_v60 = vsel %vm1173_vm4, %v1210_v47, %v1214_v31  ;;  %v1195_v61 = vor.u32 %v1194_v48, %v1190_v53  ;;  %v4670_v63 = vld [vmem:[#allocation2 + $0x30] sm:$0xff]  ;;  %v855_v1 = vmax.f32 %v765_v45, 0.0 }
 0x173   : > { %1454 = vrot.lane.b32.xlu1 %v1218_v51, %s4190_s21  ;;  %v856_v2 = vmax.f32 %v768_v54, 0.0  ;;  %v1203_v4 = vor.u32 %v1201_v55, %v1199_v52  ;;  %v1242_v5 = vshll.u32 %v4662_v56, 16  ;;  %v1237_v6 = vshll.u32 %v4664_v57, 16 }
 0x174   : > { %1452 = vrot.lane.b32.xlu0 %v1215_v60, %s4190_s21  ;;  %v882_v3 = vpack.c.bf16 %v858_v59, %v857_v58  ;;  %v1563_v11 = vrot.slane %v4668_v62, 1  ;;  %v1562_v12 = vrot.slane %v4670_v63, 1  ;;  %v1200_v18 = vsel %vm1173_vm4, %v1195_v61, %v1199_v52 }
 0x175   : > { %v881_v7 = vpack.c.bf16 %v856_v2, %v855_v1  ;;  %v3650_v8 = vpop.f32.mrb[16].mxu0  ;;  %v1239_v22 = vrot.slane %v1237_v6, 1  ;;  %v1222_v26 = vshll.u32 %v4670_v63, 16  ;;  %v1244_v29 = vrot.slane %v1242_v5, 1 }
 0x176   : > { %v1073_v13 = vrot.slane %v882_v3, 4  ;;  %v789_v14 = vadd.f32 %v3650_v8, %v4606_v34  ;;  %v780_v17 = vpop.f32.mrb[17].mxu0  ;;  %v1235_v30 = vshrl.u32 %v4664_v57, 16  ;;  %v1227_v31 = vshll.u32 %v4668_v62, 16 }
 0x177   : > { %1450 = vrot.lane.b32.xlu1 %v1203_v4, %s4190_s21  ;;  %v1072_v23 = vrot.slane %v881_v7, 4  ;;  %v781_v24 = vadd.f32 %v4606_v34, %v780_v17  ;;  %v3651_v25 = vpop.f32.mrb[18].mxu0  ;;  %v1564_v33 = vsel %vm1552_vm3, %v1562_v12, %v1563_v11  ;;  %v1246_v35 = vshrl.u32 %v4662_v56, 16 }
 0x178   : > { %1448 = vrot.lane.b32.xlu0 %v1200_v18, %s4190_s21  ;;  %1113 = vst.msk [vmem:[#allocation2 + $0x80] sm:$0xf0] %vm1026_vm2, %v1073_v13  ;;  %v792_v27 = vadd.f32 %v3651_v25, %v4606_v34  ;;  %v783_v28 = vpop.f32.mrb[19].mxu0  ;;  %v861_v36 = vmax.f32 %v789_v14, 0.0  ;;  %v1240_v38 = vor.u32 %v1239_v22, %v1235_v30  ;;  %v1224_v39 = vrot.slane %v1222_v26, 1 }
 0x179   : > { %1114 = vst.msk [vmem:[#allocation2 + $0x88] sm:$0xf] %vm1007_vm1, %v1073_v13  ;;  %1112 = vst.msk [vmem:[#allocation2 + $0x78] sm:$0xf] %vm1007_vm1, %v1072_v23  ;;  %v784_v32 = vadd.f32 %v4606_v34, %v783_v28  ;;  %v859_v40 = vmax.f32 %v781_v24, 0.0  ;;  %v1248_v43 = vor.u32 %v1246_v35, %v1244_v29  ;;  %v1229_v44 = vrot.slane %v1227_v31, 1 }
 0x17a   : > { %1111 = vst.msk [vmem:[#allocation2 + $0x70] sm:$0xf0] %vm1026_vm2, %v1072_v23  ;;  %v862_v37 = vmax.f32 %v792_v27, 0.0  ;;  %v1220_v45 = vshrl.u32 %v4670_v63, 16  ;;  %v1231_v48 = vshrl.u32 %v4668_v62, 16  ;;  %v1245_v52 = vsel %vm1173_vm4, %v1240_v38, %v1244_v29 }
 0x17b   : > { %1621 = vrot.lane.b32.xlu1 %v1563_v11, %s4189_s15  ;;  %v860_v41 = vmax.f32 %v784_v32, 0.0 }
 0x17c   : > { %1619 = vrot.lane.b32.xlu0 %v1564_v33, %s4189_s15  ;;  %v884_v42 = vpack.c.bf16 %v862_v37, %v861_v36  ;;  %v1225_v53 = vor.u32 %v1224_v39, %v1220_v45  ;;  %v1233_v61 = vor.u32 %v1231_v48, %v1229_v44 }
 0x17d   : > { %v883_v46 = vpack.c.bf16 %v860_v41, %v859_v40  ;;  %v3654_v47 = vpop.f32.mrb[20].mxu0 }
 0x17e   : > { %v1075_v49 = vrot.slane %v884_v42, 4  ;;  %v805_v50 = vadd.f32 %v3654_v47, %v4606_v34  ;;  %v796_v51 = vpop.f32.mrb[21].mxu0  ;;  %v1230_v4 = vsel %vm1173_vm4, %v1225_v53, %v1229_v44 }
 0x17f   : > { %1462 = vrot.lane.b32.xlu1 %v1248_v43, %s4190_s21  ;;  %v1074_v54 = vrot.slane %v883_v46, 4  ;;  %v797_v55 = vadd.f32 %v4606_v34, %v796_v51  ;;  %v3655_v58 = vpop.f32.mrb[22].mxu0 }
 0x180   : > { %1460 = vrot.lane.b32.xlu0 %v1245_v52, %s4190_s21  ;;  %1117 = vst.msk [vmem:[#allocation2 + $0xa0] sm:$0xf0] %vm1026_vm2, %v1075_v49  ;;  %v808_v59 = vadd.f32 %v3655_v58, %v4606_v34  ;;  %v799_v60 = vpop.f32.mrb[23].mxu0  ;;  %v865_v2 = vmax.f32 %v805_v50, 0.0  ;;  %v1610_v58 = vpop.permute.xlu1 %1609 }
 0x181   : > { %1118 = vst.msk [vmem:[#allocation2 + $0xa8] sm:$0xf] %vm1007_vm1, %v1075_v49  ;;  %1116 = vst.msk [vmem:[#allocation2 + $0x98] sm:$0xf] %vm1007_vm1, %v1074_v54  ;;  %v800_v1 = vadd.f32 %v4606_v34, %v799_v60  ;;  %v863_v5 = vmax.f32 %v797_v55, 0.0 }
 0x182   : > { %1115 = vst.msk [vmem:[#allocation2 + $0x90] sm:$0xf0] %vm1026_vm2, %v1074_v54  ;;  %v866_v3 = vmax.f32 %v808_v59, 0.0  ;;  %v1608_v59 = vpop.permute.xlu0 %1607 }
 0x183   : > { %1458 = vrot.lane.b32.xlu1 %v1233_v61, %s4190_s21  ;;  %v864_v6 = vmax.f32 %v800_v1, 0.0 }
 0x184   : > { %1456 = vrot.lane.b32.xlu0 %v1230_v4, %s4190_s21  ;;  %v886_v7 = vpack.c.bf16 %v866_v3, %v865_v2 }
 0x185   : > { %v885_v8 = vpack.c.bf16 %v864_v6, %v863_v5  ;;  %v3658_v11 = vpop.f32.mrb[24].mxu0 }
 0x186   : > { %v1077_v12 = vrot.slane %v886_v7, 4  ;;  %v821_v13 = vadd.f32 %v3658_v11, %v4606_v34  ;;  %v812_v14 = vpop.f32.mrb[25].mxu0 }
 0x187   : > { %v1076_v17 = vrot.slane %v885_v8, 4  ;;  %v813_v18 = vadd.f32 %v4606_v34, %v812_v14  ;;  %v3659_v22 = vpop.f32.mrb[26].mxu0 }
 0x188   : > { %1121 = vst.msk [vmem:[#allocation2 + $0xc0] sm:$0xf0] %vm1026_vm2, %v1077_v12  ;;  %v869_v23 = vmax.f32 %v821_v13, 0.0  ;;  %v824_v24 = vadd.f32 %v3659_v22, %v4606_v34  ;;  %v815_v25 = vpop.f32.mrb[27].mxu0 }
 0x189   : > { %1122 = vst.msk [vmem:[#allocation2 + $0xc8] sm:$0xf] %vm1007_vm1, %v1077_v12  ;;  %1120 = vst.msk [vmem:[#allocation2 + $0xb8] sm:$0xf] %vm1007_vm1, %v1076_v17  ;;  %v867_v26 = vmax.f32 %v813_v18, 0.0  ;;  %v816_v27 = vadd.f32 %v4606_v34, %v815_v25 }
 0x18a   : > { %1119 = vst.msk [vmem:[#allocation2 + $0xb0] sm:$0xf0] %vm1026_vm2, %v1076_v17  ;;  %v870_v28 = vmax.f32 %v824_v24, 0.0  ;;  %v1445_v24 = vpop.permute.xlu0 %1444 }
 0x18b   : > { %v868_v29 = vmax.f32 %v816_v27, 0.0 }
 0x18c   : > { %v888_v30 = vpack.c.bf16 %v870_v28, %v869_v23  ;;  %v1447_v23 = vpop.permute.xlu1 %1446  ;;  %v1681_v28 = vsel %vm1679_vm5, %v4589_v21, %v1445_v24 }
 0x18d   : > { %v887_v31 = vpack.c.bf16 %v868_v29, %v867_v26  ;;  %v3662_v32 = vpop.f32.mrb[28].mxu0  ;;  %v1683_v27 = vsel %vm1679_vm5, %v4587_v20, %v1447_v23  ;;  %v1754_v20 = vsel %vm1752_vm6, %v1681_v28, %v1608_v59  ;;  %v3982_v23 = vld [vmem:[%s4456_s27] sm:$0xff]  }
 0x18e   : > { %v1079_v33 = vrot.slane %v888_v30, 4  ;;  %v837_v35 = vadd.f32 %v3662_v32, %v4606_v34  ;;  %v828_v36 = vpop.f32.mrb[29].mxu0 }
 0x18f   : > { %v1078_v37 = vrot.slane %v887_v31, 4  ;;  %v4722_v39 = vld [vmem:[#allocation2 + $0xc0] sm:$0xff]  ;;  %v829_v40 = vadd.f32 %v4606_v34, %v828_v36  ;;  %v3663_v41 = vpop.f32.mrb[30].mxu0  ;;  %v1756_v31 = vsel %vm1752_vm6, %v1683_v27, %v1610_v58 }
 0x190   : > { %v4720_v38 = vld [vmem:[#allocation2 + $0xc8] sm:$0xff]  ;;  %1125 = vst.msk [vmem:[#allocation2 + $0xe0] sm:$0xf0] %vm1026_vm2, %v1079_v33  ;;  %v1589_v43 = vrot.slane %v4722_v39, 1  ;;  %v4729_v44 = vld [vmem:[#allocation2 + $0xb8] sm:$0xff]  ;;  %v873_v46 = vmax.f32 %v837_v35, 0.0  ;;  %v840_v47 = vadd.f32 %v3663_v41, %v4606_v34 }
 0x191   : > { %1126 = vst.msk [vmem:[#allocation2 + $0xe8] sm:$0xf] %vm1007_vm1, %v1079_v33  ;;  %v1590_v42 = vrot.slane %v4720_v38, 1  ;;  %v4731_v45 = vld [vmem:[#allocation2 + $0xb0] sm:$0xff]  ;;  %v831_v48 = vpop.f32.mrb[31].mxu0  ;;  %v1587_v49 = vrot.slane %v4729_v44, 1 }
 0x192   : > { %1123 = vst.msk [vmem:[#allocation2 + $0xd0] sm:$0xf0] %vm1026_vm2, %v1078_v37  ;;  %v1586_v50 = vrot.slane %v4731_v45, 1  ;;  %v1362_v51 = vshll.u32 %v4720_v38, 16  ;;  %v871_v53 = vmax.f32 %v829_v40, 0.0  ;;  %v874_v54 = vmax.f32 %v840_v47, 0.0 }
 0x193   : > { %1124 = vst.msk [vmem:[#allocation2 + $0xd8] sm:$0xf] %vm1007_vm1, %v1078_v37  ;;  %1657 = vrot.lane.b32.xlu1 %v1590_v42, %s4189_s15  ;;  %v1591_v52 = vsel %vm1552_vm3, %v1589_v43, %v1590_v42  ;;  %v832_v55 = vadd.f32 %v4606_v34, %v831_v48  ;;  %v1347_v60 = vshll.u32 %v4729_v44, 16  ;;  %v1357_v3 = vshll.u32 %v4722_v39, 16 }
 0x194   : > { %1655 = vrot.lane.b32.xlu0 %v1591_v52, %s4189_s15  ;;  %v890_v61 = vpack.c.bf16 %v874_v54, %v873_v46  ;;  %v1364_v1 = vrot.slane %v1362_v51, 1  ;;  %v1366_v4 = vshrl.u32 %v4720_v38, 16  ;;  %v1342_v6 = vshll.u32 %v4731_v45, 16 }
 0x195   : > { %v872_v2 = vmax.f32 %v832_v55, 0.0  ;;  %v1349_v5 = vrot.slane %v1347_v60, 1  ;;  %v1588_v34 = vsel %vm1552_vm3, %v1586_v50, %v1587_v49  ;;  %v1359_v11 = vrot.slane %v1357_v3, 1 }
 0x196   : > { %v1081_v7 = vrot.slane %v890_v61, 4  ;;  %v1351_v12 = vshrl.u32 %v4729_v44, 16  ;;  %v1355_v13 = vshrl.u32 %v4722_v39, 16  ;;  %v1344_v14 = vrot.slane %v1342_v6, 1  ;;  %v3981_v61 = vld [vmem:[%s5501_s5 + $0x8] sm:$0x3f]  }
 0x197   : > { %1653 = vrot.lane.b32.xlu1 %v1587_v49, %s4189_s15  ;;  %v889_v8 = vpack.c.bf16 %v872_v2, %v871_v53  ;;  %v1368_v17 = vor.u32 %v1366_v4, %v1364_v1  ;;  %v1340_v22 = vshrl.u32 %v4731_v45, 16  ;;  %v4767_v30 = vld [vmem:[#allocation2 + $0xe0] sm:$0xff]  ;;  %v1833_v41 = vshrl.u32 %v1756_v31, 16  ;;  %3878 = vmatprep.subr.msk.bf16.mxu0 %vm2140_vm7, %v3981_v61 }
 0x198   : > { %1651 = vrot.lane.b32.xlu0 %v1588_v34, %s4189_s15  ;;  %1129 = vst.msk [vmem:[#allocation2 + $0x100] sm:$0xf0] %vm1026_vm2, %v1081_v7  ;;  %v1353_v25 = vor.u32 %v1351_v12, %v1349_v5  ;;  %v1360_v26 = vor.u32 %v1359_v11, %v1355_v13  ;;  %v4772_v32 = vld [vmem:[#allocation2 + $0xe8] sm:$0xff]  ;;  %v1595_v36 = vrot.slane %v4767_v30, 1  ;;  %v1387_v37 = vshll.u32 %v4767_v30, 16 }
 0x199   : > { %1130 = vst.msk [vmem:[#allocation2 + $0x108] sm:$0xf] %vm1007_vm1, %v1081_v7  ;;  %v1080_v18 = vrot.slane %v889_v8, 4  ;;  %v1345_v29 = vor.u32 %v1344_v14, %v1340_v22  ;;  %v1596_v35 = vrot.slane %v4772_v32, 1  ;;  %v4780_v40 = vld [vmem:[#allocation2 + $0xd0] sm:$0xff]  ;;  %v1836_v42 = vshll.u32 %v1756_v31, 16 }
 0x19a   : > { %v1365_v21 = vsel %vm1173_vm4, %v1360_v26, %v1364_v1  ;;  %v1826_v43 = vshrl.u32 %v1754_v20, 16  ;;  %v1829_v46 = vshll.u32 %v1754_v20, 16  ;;  %v4782_v47 = vld [vmem:[#allocation2 + $0xd8] sm:$0xff]  ;;  %v1392_v48 = vshll.u32 %v4772_v32, 16 }
 0x19b   : > { %1494 = vrot.lane.b32.xlu1 %v1368_v17, %s4190_s21  ;;  %1127 = vst.msk [vmem:[#allocation2 + $0xf0] sm:$0xf0] %vm1026_vm2, %v1080_v18  ;;  %v1350_v33 = vsel %vm1173_vm4, %v1345_v29, %v1349_v5  ;;  %v1593_v49 = vrot.slane %v4782_v47, 1  ;;  %v1592_v50 = vrot.slane %v4780_v40, 1  ;;  %v1597_v51 = vsel %vm1552_vm3, %v1595_v36, %v1596_v35 }
 0x19c   : > { %1128 = vst.msk [vmem:[#allocation2 + $0xf8] sm:$0xf] %vm1007_vm1, %v1080_v18  ;;  %1490 = vrot.lane.b32.xlu0 %v1353_v25, %s4190_s21  ;;  %v1385_v52 = vshrl.u32 %v4767_v30, 16  ;;  %v1389_v53 = vrot.slane %v1387_v37, 1  ;;  %v1372_v54 = vshll.u32 %v4780_v40, 16  ;;  %v1835_v55 = vrot.slane %v1833_v41, 3 }
 0x19d   : > { %v1838_v58 = vrot.slane %v1836_v42, 4  ;;  %v1828_v59 = vrot.slane %v1826_v43, 3  ;;  %v1831_v60 = vrot.slane %v1829_v46, 4  ;;  %v1394_v1 = vrot.slane %v1392_v48, 1  ;;  %v4836_v46 = vld [vmem:[#allocation2 + $0x50] sm:$0xff] }
 0x19e   : > { %v1396_v2 = vshrl.u32 %v4772_v32, 16  ;;  %v1377_v3 = vshll.u32 %v4782_v47, 16  ;;  %v1594_v4 = vsel %vm1552_vm3, %v1592_v50, %v1593_v49  ;;  %v1390_v5 = vor.u32 %v1389_v53, %v1385_v52  ;;  %v3983_v48 = vld [vmem:[%s4761_s14] sm:$0xff]   ;;  %v4845_v52 = vld [vmem:[%s5501_s5] sm:$0x3f]  }
 0x19f   : > { %1492 = vrot.lane.b32.xlu1 %v1365_v21, %s4190_s21  ;;  %v1370_v6 = vshrl.u32 %v4780_v40, 16  ;;  %v1374_v34 = vrot.slane %v1372_v54, 1  ;;  %v1839_v7 = vor.u32 %v1838_v58, %v1835_v55  ;;  %v1832_v8 = vor.u32 %v1831_v60, %v1828_v59  ;;  %v4808_v24 = vld [vmem:[#allocation2 + $0x100] sm:$0xff]  ;;  %v4847_v53 = vld [vmem:[#allocation2 + $0x58] sm:$0xff] }
 0x1a0   : > { %1488 = vrot.lane.b32.xlu0 %v1350_v33, %s4190_s21  ;;  %v2142_v11 = vsel %vm2140_vm7, %v3981_v61, 0  ;;  %v1398_v12 = vor.u32 %v1396_v2, %v1394_v1  ;;  %v1379_v13 = vrot.slane %v1377_v3, 1  ;;  %v1381_v14 = vshrl.u32 %v4782_v47, 16  ;;  %v4814_v27 = vld [vmem:[#allocation2 + $0x108] sm:$0xff] }
 0x1a1   : > { %3677 = vmatpush3.bf16.msra.mxu0 %v2142_v11  ;;  %v1395_v17 = vsel %vm1173_vm4, %v1390_v5, %v1394_v1  ;;  %v1375_v18 = vor.u32 %v1374_v34, %v1370_v6  ;;  %v4191_v22 = vmov 0.0   ;;  %v4812_v25 = vsel %vm1825_vm8, %v1832_v8, %v1839_v7 }
 0x1a2   : > { %3664 = vmatprep.subr.bf16.mxu1 %v4191_v22  ;;  %v1383_v26 = vor.u32 %v1381_v14, %v1379_v13  ;;  %3666 = vmatprep.mubr.msk.bf16.mxu1 %vm4192_vm9, %v4191_v22  ;;  %v1602_v28 = vrot.slane %v4814_v27, 1  ;;  %v1601_v29 = vrot.slane %v4808_v24, 1  ;;  %v1417_v20 = vshll.u32 %v4808_v24, 16  ;;  %v4823_v21 = vld [vmem:[#allocation2 + $0xf0] sm:$0xff]  ;;  %v4867_v14 = vld [vmem:[#allocation2 + $0x60] sm:$0xff] }
 0x1a3   : > { %1665 = vrot.lane.b32.xlu1 %v1596_v35, %s4189_s15  ;;  %3665 = vmatpush3.bf16.msra.mxu1 %v4475_v0  ;;  %v1380_v31 = vsel %vm1173_vm4, %v1375_v18, %v1379_v13  ;;  %v1422_v33 = vshll.u32 %v4814_v27, 16  ;;  %v4829_v36 = vld [vmem:[#allocation2 + $0xf8] sm:$0xff]  ;;  %v1415_v37 = vshrl.u32 %v4808_v24, 16  ;;  %v1598_v42 = vrot.slane %v4823_v21, 1  ;;  %v4869_v18 = vld [vmem:[#allocation2 + $0x68] sm:$0xff] }
 0x1a4   : > { %1663 = vrot.lane.b32.xlu0 %v1597_v51, %s4189_s15  ;;  %3670 = vmatprep.subr.bf16.mxu1 %v4191_v22  ;;  %v1603_v35 = vsel %vm1552_vm3, %v1601_v29, %v1602_v28  ;;  %v1599_v41 = vrot.slane %v4829_v36, 1  ;;  %v1419_v43 = vrot.slane %v1417_v20, 1  ;;  %v1426_v50 = vshrl.u32 %v4814_v27, 16  ;;  %v4877_v29 = vld [vmem:[#allocation2 + $0x70] sm:$0xff] }
 0x1a5   : > { %v1407_v51 = vshll.u32 %v4829_v36, 16  ;;  %v1252_v54 = vshll.u32 %v4836_v46, 16  ;;  %v1400_v59 = vshrl.u32 %v4823_v21, 16  ;;  %v1411_v2 = vshrl.u32 %v4829_v36, 16 }
 0x1a6   : > { %3667 = vmatmul.mubr.msk.bf16.vlgmr.msra.gmra.mrb[0].mxu1 %vm633_vm0, %v3982_v23  ;;  %v1600_v55 = vsel %vm1552_vm3, %v1598_v42, %v1599_v41  ;;  %v1420_v58 = vor.u32 %v1419_v43, %v1415_v37  ;;  %v1257_v3 = vshll.u32 %v4847_v53, 16  ;;  %v1250_v8 = vshrl.u32 %v4836_v46, 16 }
 0x1a7   : > { %1661 = vrot.lane.b32.xlu1 %v1593_v49, %s4189_s15  ;;  %3671 = vmatpush3.bf16.msra.mxu1 %v4475_v0  ;;  %v1402_v0 = vshll.u32 %v4823_v21, 16  ;;  %v1424_v49 = vrot.slane %v1422_v33, 1  ;;  %v1409_v1 = vrot.slane %v1407_v51, 1  ;;  %v1254_v6 = vrot.slane %v1252_v54, 1  ;;  %v4881_v33 = vld [vmem:[#allocation2 + $0x78] sm:$0xff] }
 0x1a8   : > { %1659 = vrot.lane.b32.xlu0 %v1594_v4, %s4189_s15  ;;  %3672 = vmatprep.mubr.msk.bf16.mxu1 %vm4192_vm9, %v4191_v22  ;;  %v1259_v7 = vrot.slane %v1257_v3, 1  ;;  %v1566_v23 = vrot.slane %v4662_v56, 1  ;;  %v1569_v20 = vrot.slane %v4847_v53, 1  ;;  %v1568_v56 = vrot.slane %v4836_v46, 1 }
 0x1a9   : > { %3879 = vmatprep.subr.msk.bf16.mxu1 %vm2140_vm7, %v3981_v61  ;;  %v1404_v60 = vrot.slane %v1402_v0, 1  ;;  %v1428_v61 = vor.u32 %v1426_v50, %v1424_v49  ;;  %v1425_v4 = vsel %vm1173_vm4, %v1420_v58, %v1424_v49  ;;  %v1413_v34 = vor.u32 %v1411_v2, %v1409_v1  ;;  %v4901_v2 = vld [vmem:[#allocation2 + $0x88] sm:$0xff] }
 0x1aa   : > { %v1255_v13 = vor.u32 %v1254_v6, %v1250_v8  ;;  %v1265_v42 = vshrl.u32 %v4867_v14, 16  ;;  %v1287_v43 = vshll.u32 %v4881_v33, 16  ;;  %v1570_v0 = vsel %vm1552_vm3, %v1568_v56, %v1569_v20 }
 0x1ab   : > { %1502 = vrot.lane.b32.xlu1 %v1398_v12, %s4190_s21  ;;  %v1405_v5 = vor.u32 %v1404_v60, %v1400_v59  ;;  %v1261_v12 = vshrl.u32 %v4847_v53, 16  ;;  %v1291_v59 = vshrl.u32 %v4881_v33, 16  ;;  %v1575_v8 = vrot.slane %v4881_v33, 1 }
 0x1ac   : > { %1500 = vrot.lane.b32.xlu0 %v1395_v17, %s4190_s21  ;;  %v1260_v22 = vsel %vm1173_vm4, %v1255_v13, %v1259_v7  ;;  %v1289_v54 = vrot.slane %v1287_v43, 1  ;;  %v1574_v13 = vrot.slane %v4877_v29, 1 }
 0x1ad   : > { %v1263_v17 = vor.u32 %v1261_v12, %v1259_v7  ;;  %v1302_v7 = vshll.u32 %v4901_v2, 16 }
 0x1ae   : > { %3673 = vmatmul.mubr.msk.bf16.vlgmr.msra.gmra.mrb[4].mxu1 %vm633_vm0, %v3983_v48  ;;  %v1276_v48 = vshrl.u32 %v4869_v18, 16 }
 0x1af   : > { %1498 = vrot.lane.b32.xlu1 %v1383_v26, %s4190_s21  ;;  %3813 = vmatpush3.bf16.msra.mxu1 %v2142_v11  ;;  %v1410_v11 = vsel %vm1173_vm4, %v1405_v5, %v1409_v1  ;;  %v1565_v26 = vrot.slane %v4664_v57, 1  ;;  %v1282_v57 = vshll.u32 %v4877_v29, 16  ;;  %v1293_v1 = vor.u32 %v1291_v59, %v1289_v54 }
 0x1b0   : > { %1496 = vrot.lane.b32.xlu0 %v1380_v31, %s4190_s21  ;;  %3880 = vmatprep.subr.msk.bf16.mxu1 %vm2140_vm7, %v4845_v52  ;;  %v1272_v31 = vshll.u32 %v4869_v18, 16  ;;  %v1571_v5 = vrot.slane %v4867_v14, 1 }
 0x1b1   : > { %v1284_v50 = vrot.slane %v1282_v57, 1 }
 0x1b3   : > { %1673 = vrot.lane.b32.xlu1 %v1602_v28, %s4189_s15  ;;  %v1267_v28 = vshll.u32 %v4867_v14, 16 }
 0x1b4   : > { %1671 = vrot.lane.b32.xlu0 %v1603_v35, %s4189_s15  ;;  %v1567_v35 = vsel %vm1552_vm3, %v1565_v26, %v1566_v23 }
 0x1b5   : > { %v1269_v37 = vrot.slane %v1267_v28, 1 }
 0x1b7   : > { %1669 = vrot.lane.b32.xlu1 %v1599_v41, %s4189_s15  ;;  %v1274_v41 = vrot.slane %v1272_v31, 1  ;;  %v1270_v49 = vor.u32 %v1269_v37, %v1265_v42  ;;  %v1576_v31 = vsel %vm1552_vm3, %v1574_v13, %v1575_v8 }
 0x1b8   : > { %1667 = vrot.lane.b32.xlu0 %v1600_v55, %s4189_s15  ;;  %v1280_v55 = vshrl.u32 %v4877_v29, 16 }
 0x1b9   : > { %v1278_v51 = vor.u32 %v1276_v48, %v1274_v41  ;;  %v1275_v58 = vsel %vm1173_vm4, %v1270_v49, %v1274_v41 }
 0x1ba   : > { %v1285_v60 = vor.u32 %v1284_v50, %v1280_v55 }
 0x1bb   : > { %1510 = vrot.lane.b32.xlu1 %v1428_v61, %s4190_s21  ;;  %v4899_v61 = vld [vmem:[#allocation2 + $0x80] sm:$0xff] }
 0x1bc   : > { %1508 = vrot.lane.b32.xlu0 %v1425_v4, %s4190_s21  ;;  %v1290_v3 = vsel %vm1173_vm4, %v1285_v60, %v1289_v54  ;;  %v1572_v4 = vrot.slane %v4869_v18, 1  ;;  %v1297_v6 = vshll.u32 %v4899_v61, 16  ;;  %v1295_v26 = vshrl.u32 %v4899_v61, 16 }
 0x1bd   : > { %v1578_v60 = vrot.slane %v4901_v2, 1 }
 0x1be   : > { %v1573_v12 = vsel %vm1552_vm3, %v1571_v5, %v1572_v4 }
 0x1bf   : > { %1506 = vrot.lane.b32.xlu1 %v1413_v34, %s4190_s21  ;;  %v4909_v34 = vld [vmem:[#allocation2 + $0x90] sm:$0xff] }
 0x1c0   : > { %1504 = vrot.lane.b32.xlu0 %v1410_v11, %s4190_s21  ;;  %v4913_v11 = vld [vmem:[#allocation2 + $0x98] sm:$0xff]  ;;  %v1310_v42 = vshrl.u32 %v4909_v34, 16 }
 0x1c1   : > { %v1317_v28 = vshll.u32 %v4913_v11, 16  ;;  %v1321_v49 = vshrl.u32 %v4913_v11, 16  ;;  %v1581_v5 = vrot.slane %v4913_v11, 1 }
 0x1c3   : > { %1466 = vrot.lane.b32.xlu1 %v1263_v17, %s4190_s21  ;;  %v1299_v17 = vrot.slane %v1297_v6, 1  ;;  %v1319_v41 = vrot.slane %v1317_v28, 1  ;;  %v1580_v6 = vrot.slane %v4909_v34, 1 }
 0x1c4   : > { %1464 = vrot.lane.b32.xlu0 %v1260_v22, %s4190_s21  ;;  %v1312_v22 = vshll.u32 %v4909_v34, 16 }
 0x1c5   : > { %v1323_v55 = vor.u32 %v1321_v49, %v1319_v41 }
 0x1c6   : > { %v1314_v56 = vrot.slane %v1312_v22, 1 }
 0x1c7   : > { %1625 = vrot.lane.b32.xlu1 %v1566_v23, %s4189_s15  ;;  %v1304_v23 = vrot.slane %v1302_v7, 1 }
 0x1c8   : > { %1623 = vrot.lane.b32.xlu0 %v1567_v35, %s4189_s15  ;;  %v1300_v35 = vor.u32 %v1299_v17, %v1295_v26  ;;  %v1315_v50 = vor.u32 %v1314_v56, %v1310_v42  ;;  %v4948_v26 = vld [vmem:[#allocation2 + $0x110] sm:$0xff] }
 0x1ca   : > { %v1305_v48 = vsel %vm1173_vm4, %v1300_v35, %v1304_v23 }
 0x1cb   : > { %1629 = vrot.lane.b32.xlu1 %v1569_v20, %s4189_s15  ;;  %v1306_v20 = vshrl.u32 %v4901_v2, 16 }
 0x1cc   : > { %1627 = vrot.lane.b32.xlu0 %v1570_v0, %s4189_s15  ;;  %v4927_v0 = vld [vmem:[#allocation2 + $0xa8] sm:$0xff] }
 0x1cd   : > { %v1308_v57 = vor.u32 %v1306_v20, %v1304_v23  ;;  %v1336_v22 = vshrl.u32 %v4927_v0, 16  ;;  %v1582_v20 = vsel %vm1552_vm3, %v1580_v6, %v1581_v5  ;;  %v1584_v42 = vrot.slane %v4927_v0, 1 }
 0x1cf   : > { %1470 = vrot.lane.b32.xlu1 %v1278_v51, %s4190_s21  ;;  %v4932_v51 = vld [vmem:[#allocation2 + $0xa0] sm:$0xff] }
 0x1d0   : > { %1468 = vrot.lane.b32.xlu0 %v1275_v58, %s4190_s21  ;;  %v1332_v58 = vshll.u32 %v4927_v0, 16  ;;  %v1325_v35 = vshrl.u32 %v4932_v51, 16 }
 0x1d3   : > { %1474 = vrot.lane.b32.xlu1 %v1293_v1, %s4190_s21  ;;  %v1577_v1 = vrot.slane %v4899_v61, 1 }
 0x1d4   : > { %1472 = vrot.lane.b32.xlu0 %v1290_v3, %s4190_s21  ;;  %v1327_v3 = vshll.u32 %v4932_v51, 16 }
 0x1d5   : > { %v1579_v17 = vsel %vm1552_vm3, %v1577_v1, %v1578_v60 }
 0x1d6   : > { %v1329_v23 = vrot.slane %v1327_v3, 1 }
 0x1d7   : > { %1633 = vrot.lane.b32.xlu1 %v1572_v4, %s4189_s15  ;;  %v1320_v4 = vsel %vm1173_vm4, %v1315_v50, %v1319_v41  ;;  %v1432_v50 = vshll.u32 %v4948_v26, 16 }
 0x1d8   : > { %1631 = vrot.lane.b32.xlu0 %v1573_v12, %s4189_s15  ;;  %v1330_v1 = vor.u32 %v1329_v23, %v1325_v35 }
 0x1d9   : > { %v1434_v35 = vrot.slane %v1432_v50, 1 }
 0x1db   : > { %1637 = vrot.lane.b32.xlu1 %v1575_v8, %s4189_s15  ;;  %v1334_v8 = vrot.slane %v1332_v58, 1 }
 0x1dc   : > { %1635 = vrot.lane.b32.xlu0 %v1576_v31, %s4189_s15 }
 0x1dd   : > { %v1618_v37 = vpop.permute.xlu1 %1617 }
 0x1de   : > { %v1616_v43 = vpop.permute.xlu0 %1615 }
 0x1df   : > { %1478 = vrot.lane.b32.xlu1 %v1308_v57, %s4190_s21 }
 0x1e0   : > { %1476 = vrot.lane.b32.xlu0 %v1305_v48, %s4190_s21 }
 0x1e1   : > { %v1614_v54 = vpop.permute.xlu1 %1613 }
 0x1e2   : > { %v1612_v59 = vpop.permute.xlu0 %1611 }
 0x1e3   : > { %1482 = vrot.lane.b32.xlu1 %v1323_v55, %s4190_s21 }
 0x1e4   : > { %1480 = vrot.lane.b32.xlu0 %v1320_v4, %s4190_s21 }
 0x1e5   : > { %v1455_v7 = vpop.permute.xlu1 %1454 }
 0x1e6   : > { %v1691_v12 = vsel %vm1679_vm5, %v4622_v9, %v1455_v7  ;;  %v1453_v13 = vpop.permute.xlu0 %1452  ;;  %v4956_v9 = vld [vmem:[#allocation2 + $0x118] sm:$0xff] }
 0x1e7   : > { %v1764_v28 = vsel %vm1752_vm6, %v1691_v12, %v1618_v37  ;;  %v1689_v31 = vsel %vm1679_vm5, %v4624_v10, %v1453_v13  ;;  %1641 = vrot.lane.b32.xlu1 %v1578_v60, %s4189_s15  ;;  %v1338_v10 = vor.u32 %v1336_v22, %v1334_v8  ;;  %v1437_v3 = vshll.u32 %v4956_v9, 16 }
 0x1e8   : > { %v1863_v56 = vshrl.u32 %v1764_v28, 16  ;;  %v1866_v57 = vshll.u32 %v1764_v28, 16  ;;  %v1762_v41 = vsel %vm1752_vm6, %v1689_v31, %v1616_v43  ;;  %1639 = vrot.lane.b32.xlu0 %v1579_v17, %s4189_s15  ;;  %v1430_v31 = vshrl.u32 %v4948_v26, 16 }
 0x1e9   : > { %v1856_v37 = vshrl.u32 %v1762_v41, 16  ;;  %v1859_v48 = vshll.u32 %v1762_v41, 16  ;;  %v1451_v49 = vpop.permute.xlu1 %1450 }
 0x1ea   : > { %v1865_v55 = vrot.slane %v1863_v56, 3  ;;  %v1687_v58 = vsel %vm1679_vm5, %v4631_v15, %v1451_v49  ;;  %v1449_v60 = vpop.permute.xlu0 %1448  ;;  %v1868_v4 = vrot.slane %v1866_v57, 4 }
 0x1eb   : > { %v1858_v43 = vrot.slane %v1856_v37, 3  ;;  %v1760_v6 = vsel %vm1752_vm6, %v1687_v58, %v1614_v54  ;;  %v1685_v7 = vsel %vm1679_vm5, %v4633_v16, %v1449_v60  ;;  %1645 = vrot.lane.b32.xlu1 %v1581_v5, %s4189_s15  ;;  %v1861_v12 = vrot.slane %v1859_v48, 4 }
 0x1ec   : > { %v1848_v13 = vshrl.u32 %v1760_v6, 16  ;;  %v1851_v17 = vshll.u32 %v1760_v6, 16  ;;  %v1758_v22 = vsel %vm1752_vm6, %v1685_v7, %v1612_v59  ;;  %1643 = vrot.lane.b32.xlu0 %v1582_v20, %s4189_s15  ;;  %v1335_v16 = vsel %vm1173_vm4, %v1330_v1, %v1334_v8 }
 0x1ed   : > { %v1841_v15 = vshrl.u32 %v1758_v22, 16  ;;  %v1844_v23 = vshll.u32 %v1758_v22, 16  ;;  %v1622_v28 = vpop.permute.xlu1 %1621  ;;  %v1583_v5 = vrot.slane %v4932_v51, 1  ;;  %v1439_v59 = vrot.slane %v1437_v3, 1 }
 0x1ee   : > { %v1850_v56 = vrot.slane %v1848_v13, 3  ;;  %v1853_v54 = vrot.slane %v1851_v17, 4  ;;  %v1620_v57 = vpop.permute.xlu0 %1619  ;;  %v1441_v20 = vshrl.u32 %v4956_v9, 16  ;;  %v1869_v48 = vor.u32 %v1868_v4, %v1865_v55 }
 0x1ef   : > { %v1843_v41 = vrot.slane %v1841_v15, 3  ;;  %v1846_v37 = vrot.slane %v1844_v23, 4  ;;  %1486 = vrot.lane.b32.xlu1 %v1338_v10, %s4190_s21  ;;  %v1862_v49 = vor.u32 %v1861_v12, %v1858_v43  ;;  %v1435_v6 = vor.u32 %v1434_v35, %v1430_v31 }
 0x1f0   : > { %v1854_v58 = vor.u32 %v1853_v54, %v1850_v56  ;;  %1484 = vrot.lane.b32.xlu0 %v1335_v16, %s4190_s21  ;;  %v1585_v1 = vsel %vm1552_vm3, %v1583_v5, %v1584_v42  ;;  %v1443_v3 = vor.u32 %v1441_v20, %v1439_v59  ;;  %v1604_v7 = vrot.slane %v4948_v26, 1 }
 0x1f1   : > { %v1847_v50 = vor.u32 %v1846_v37, %v1843_v41  ;;  %v4977_v60 = vpop.permute.xlu1 %1462  ;;  %v4990_v55 = vsel %vm1825_vm8, %v1862_v49, %v1869_v48  ;;  %v1440_v43 = vsel %vm1173_vm4, %v1435_v6, %v1439_v59 }
 0x1f2   : > { %v4979_v8 = vpop.permute.xlu0 %1460 }
 0x1f3   : > { %1649 = vrot.lane.b32.xlu1 %v1584_v42, %s4189_s15  ;;  %v4984_v10 = vsel %vm1825_vm8, %v1847_v50, %v1854_v58  ;;  %v1605_v42 = vrot.slane %v4956_v9, 1 }
 0x1f4   : > { %1647 = vrot.lane.b32.xlu0 %v1585_v1, %s4189_s15  ;;  %3678 = vmatprep.mubr.msk.bf16.mxu0 %vm2091_vm10, %v4984_v10 }
 0x1f5   : > { %v1459_v4 = vpop.permute.xlu1 %1458  ;;  %3679 = vmatmul.mubr.msk.bf16.vlgmr.msra.gmra.mrb[32].mxu0 %vm2091_vm10, %v4990_v55  ;;  %v1606_v54 = vsel %vm1552_vm3, %v1604_v7, %v1605_v42 }
 0x1f6   : > { %v1695_v12 = vsel %vm1679_vm5, %v4668_v62, %v1459_v4  ;;  %v1457_v13 = vpop.permute.xlu0 %1456 }
 0x1f7   : > { %v1768_v17 = vsel %vm1752_vm6, %v1695_v12, %v1622_v28  ;;  %v1693_v22 = vsel %vm1679_vm5, %v4670_v63, %v1457_v13  ;;  %1514 = vrot.lane.b32.xlu1 %v1443_v3, %s4190_s21 }
 0x1f8   : > { %v1878_v15 = vshrl.u32 %v1768_v17, 16  ;;  %v1881_v23 = vshll.u32 %v1768_v17, 16  ;;  %v1766_v31 = vsel %vm1752_vm6, %v1693_v22, %v1620_v57  ;;  %1512 = vrot.lane.b32.xlu0 %v1440_v43, %s4190_s21 }
 0x1f9   : > { %v1871_v35 = vshrl.u32 %v1766_v31, 16  ;;  %v1874_v56 = vshll.u32 %v1766_v31, 16 }
 0x1fa   : > { %v1880_v16 = vrot.slane %v1878_v15, 3  ;;  %v1883_v62 = vrot.slane %v1881_v23, 4 }
 0x1fb   : > { %v1873_v5 = vrot.slane %v1871_v35, 3  ;;  %v1876_v41 = vrot.slane %v1874_v56, 4  ;;  %1677 = vrot.lane.b32.xlu1 %v1605_v42, %s4189_s15 }
 0x1fc   : > { %v1884_v28 = vor.u32 %v1883_v62, %v1880_v16  ;;  %1675 = vrot.lane.b32.xlu0 %v1606_v54, %s4189_s15  ;;  %s5546_s15 = sld [smem:[#allocation18_spill]] }
 0x1fd   : > { %v1877_v63 = vor.u32 %v1876_v41, %v1873_v5 }
 0x1ff   : > { %v5009_v37 = vsel %vm1825_vm8, %v1877_v63, %v1884_v28 }
 0x200   : > { %3682 = vmatprep.mubr.msk.bf16.mxu0 %vm2091_vm10, %v5009_v37 }
 0x202   : > { %p5549_p10 = scmp.ne.s32.totalorder %s5546_s15, 0 }
 0x205   : > { %v1658_v57 = vpop.permute.xlu1 %1657 }
 0x206   : > { %v1656_v59 = vpop.permute.xlu0 %1655 }
 0x209   : > { %v1654_v20 = vpop.permute.xlu1 %1653 }
 0x20a   : > { %v1652_v48 = vpop.permute.xlu0 %1651 }
 0x20d   : > { %v1495_v49 = vpop.permute.xlu1 %1494 }
 0x20e   : > { %v1731_v58 = vsel %vm1679_vm5, %v4720_v38, %v1495_v49  ;;  %v1491_v50 = vpop.permute.xlu0 %1490 }
 0x20f   : > { %v1804_v6 = vsel %vm1752_vm6, %v1731_v58, %v1658_v57  ;;  %v1727_v1 = vsel %vm1679_vm5, %v4729_v44, %v1491_v50 }
 0x210   : > { %v1800_v3 = vsel %vm1752_vm6, %v1727_v1, %v1654_v20  ;;  %v2013_v7 = vshrl.u32 %v1804_v6, 16  ;;  %v2016_v12 = vshll.u32 %v1804_v6, 16  ;;  %v2314_v6 = vsel %vm2140_vm7, %v4845_v52, 0  ;;  %v5033_v1 = vld [vmem:[%s5501_s5 + $0x10] sm:$0x3f]  }
 0x211   : > { %v1998_v4 = vshrl.u32 %v1800_v3, 16  ;;  %v2001_v43 = vshll.u32 %v1800_v3, 16  ;;  %v1493_v42 = vpop.permute.xlu1 %1492 }
 0x212   : > { %v1729_v13 = vsel %vm1679_vm5, %v4722_v39, %v1493_v42  ;;  %v1489_v17 = vpop.permute.xlu0 %1488  ;;  %v2015_v62 = vrot.slane %v2013_v7, 3  ;;  %v2018_v5 = vrot.slane %v2016_v12, 4 }
 0x213   : > { %v1802_v22 = vsel %vm1752_vm6, %v1729_v13, %v1656_v59  ;;  %v1725_v38 = vsel %vm1679_vm5, %v4731_v45, %v1489_v17  ;;  %v2000_v31 = vrot.slane %v1998_v4, 3  ;;  %v2003_v35 = vrot.slane %v2001_v43, 4 }
 0x214   : > { %v2006_v15 = vshrl.u32 %v1802_v22, 16  ;;  %v2009_v23 = vshll.u32 %v1802_v22, 16  ;;  %v1798_v44 = vsel %vm1752_vm6, %v1725_v38, %v1652_v48  ;;  %v2019_v58 = vor.u32 %v2018_v5, %v2015_v62 }
 0x215   : > { %v1991_v56 = vshrl.u32 %v1798_v44, 16  ;;  %v1994_v54 = vshll.u32 %v1798_v44, 16  ;;  %v1666_v16 = vpop.permute.xlu1 %1665  ;;  %v2004_v20 = vor.u32 %v2003_v35, %v2000_v31 }
 0x216   : > { %v2008_v41 = vrot.slane %v2006_v15, 3  ;;  %v2011_v28 = vrot.slane %v2009_v23, 4  ;;  %v1664_v39 = vpop.permute.xlu0 %1663 }
 0x217   : > { %v1993_v63 = vrot.slane %v1991_v56, 3  ;;  %v1996_v57 = vrot.slane %v1994_v54, 4 }
 0x218   : > { %v2012_v59 = vor.u32 %v2011_v28, %v2008_v41 }
 0x219   : > { %v1997_v49 = vor.u32 %v1996_v57, %v1993_v63  ;;  %v1662_v45 = vpop.permute.xlu1 %1661 }
 0x21a   : > { %v1660_v50 = vpop.permute.xlu0 %1659  ;;  %v5038_v3 = vsel %vm1825_vm8, %v2012_v59, %v2019_v58 }
 0x21b   : > { %v5026_v48 = vsel %vm1825_vm8, %v1997_v49, %v2004_v20 }
 0x21c   : > { %3698 = vmatprep.mubr.msk.bf16.mxu1 %vm2091_vm10, %v5026_v48 }
 0x21d   : > { %v1503_v4 = vpop.permute.xlu1 %1502  ;;  %3699 = vmatmul.mubr.msk.bf16.vlgmr.msra.gmra.mrb[8].mxu1 %vm2091_vm10, %v5038_v3 }
 0x21e   : > { %v1739_v43 = vsel %vm1679_vm5, %v4772_v32, %v1503_v4  ;;  %v1501_v42 = vpop.permute.xlu0 %1500  ;;  %3711 = vmatpush3.bf16.msra.mxu1 %v2314_v6 }
 0x21f   : > { %v1812_v52 = vsel %vm1752_vm6, %v1739_v43, %v1666_v16  ;;  %v1737_v7 = vsel %vm1679_vm5, %v4767_v30, %v1501_v42  ;;  %3881 = vmatprep.subr.msk.bf16.mxu1 %vm2140_vm7, %v5033_v1 }
 0x220   : > { %v2043_v12 = vshrl.u32 %v1812_v52, 16  ;;  %v2046_v13 = vshll.u32 %v1812_v52, 16  ;;  %v1810_v17 = vsel %vm1752_vm6, %v1737_v7, %v1664_v39 }
 0x221   : > { %v2036_v22 = vshrl.u32 %v1810_v17, 16  ;;  %v2039_v38 = vshll.u32 %v1810_v17, 16  ;;  %v1499_v15 = vpop.permute.xlu1 %1498 }
 0x222   : > { %v2045_v23 = vrot.slane %v2043_v12, 3  ;;  %v1735_v32 = vsel %vm1679_vm5, %v4782_v47, %v1499_v15  ;;  %v1497_v44 = vpop.permute.xlu0 %1496  ;;  %v2048_v31 = vrot.slane %v2046_v13, 4 }
 0x223   : > { %v2038_v35 = vrot.slane %v2036_v22, 3  ;;  %v1808_v56 = vsel %vm1752_vm6, %v1735_v32, %v1662_v45  ;;  %v1733_v30 = vsel %vm1679_vm5, %v4780_v40, %v1497_v44  ;;  %v2041_v54 = vrot.slane %v2039_v38, 4 }
 0x224   : > { %v2028_v16 = vshrl.u32 %v1808_v56, 16  ;;  %v2031_v62 = vshll.u32 %v1808_v56, 16  ;;  %v1806_v5 = vsel %vm1752_vm6, %v1733_v30, %v1660_v50  ;;  %v2049_v49 = vor.u32 %v2048_v31, %v2045_v23 }
 0x225   : > { %v2021_v41 = vshrl.u32 %v1806_v5, 16  ;;  %v2024_v28 = vshll.u32 %v1806_v5, 16  ;;  %v1674_v39 = vpop.permute.xlu1 %1673  ;;  %v2042_v58 = vor.u32 %v2041_v54, %v2038_v35 }
 0x226   : > { %v2030_v63 = vrot.slane %v2028_v16, 3  ;;  %v2033_v57 = vrot.slane %v2031_v62, 4  ;;  %v1672_v59 = vpop.permute.xlu0 %1671 }
 0x227   : > { %v2023_v47 = vrot.slane %v2021_v41, 3  ;;  %v2026_v20 = vrot.slane %v2024_v28, 4  ;;  %v5062_v50 = vsel %vm1825_vm8, %v2042_v58, %v2049_v49 }
 0x228   : > { %v2034_v6 = vor.u32 %v2033_v57, %v2030_v63 }
 0x229   : > { %v2027_v45 = vor.u32 %v2026_v20, %v2023_v47  ;;  %v1670_v4 = vpop.permute.xlu1 %1669 }
 0x22a   : > { %v1668_v43 = vpop.permute.xlu0 %1667 }
 0x22b   : > { %v5057_v40 = vsel %vm1825_vm8, %v2027_v45, %v2034_v6  ;;  %v3986_v6 = vld [vmem:[#allocation2 + $0x48] sm:$0xff] }
 0x22c   : > { %3702 = vmatprep.mubr.msk.bf16.mxu1 %vm2091_vm10, %v5057_v40 }
 0x22d   : > { %v1511_v42 = vpop.permute.xlu1 %1510  ;;  %3703 = vmatmul.mubr.msk.bf16.gmra.mrb[12].mxu1 %vm2091_vm10, %v5062_v50 }
 0x22e   : > { %v1747_v52 = vsel %vm1679_vm5, %v4814_v27, %v1511_v42  ;;  %v1509_v7 = vpop.permute.xlu0 %1508  ;;  %v3987_v42 = vld [vmem:[#allocation2 + $0x40] sm:$0xff] }
 0x22f   : > { %v1820_v12 = vsel %vm1752_vm6, %v1747_v52, %v1674_v39  ;;  %v1745_v13 = vsel %vm1679_vm5, %v4808_v24, %v1509_v7 }
 0x230   : > { %v2075_v17 = vshrl.u32 %v1820_v12, 16  ;;  %v2078_v22 = vshll.u32 %v1820_v12, 16  ;;  %v1818_v38 = vsel %vm1752_vm6, %v1745_v13, %v1672_v59 }
 0x231   : > { %v2068_v15 = vshrl.u32 %v1818_v38, 16  ;;  %v2071_v23 = vshll.u32 %v1818_v38, 16  ;;  %v1507_v32 = vpop.permute.xlu1 %1506 }
 0x232   : > { %v2077_v44 = vrot.slane %v2075_v17, 3  ;;  %v1743_v31 = vsel %vm1679_vm5, %v4829_v36, %v1507_v32  ;;  %v1505_v35 = vpop.permute.xlu0 %1504  ;;  %v2080_v56 = vrot.slane %v2078_v22, 4 }
 0x233   : > { %v2070_v27 = vrot.slane %v2068_v15, 3  ;;  %v1816_v30 = vsel %vm1752_vm6, %v1743_v31, %v1670_v4  ;;  %v1741_v54 = vsel %vm1679_vm5, %v4823_v21, %v1505_v35  ;;  %v2073_v24 = vrot.slane %v2071_v23, 4 }
 0x234   : > { %v2058_v16 = vshrl.u32 %v1816_v30, 16  ;;  %v2061_v62 = vshll.u32 %v1816_v30, 16  ;;  %v1814_v5 = vsel %vm1752_vm6, %v1741_v54, %v1668_v43  ;;  %v2081_v20 = vor.u32 %v2080_v56, %v2077_v44 }
 0x235   : > { %v2051_v41 = vshrl.u32 %v1814_v5, 16  ;;  %v2054_v28 = vshll.u32 %v1814_v5, 16  ;;  %v1467_v39 = vpop.permute.xlu1 %1466  ;;  %v2074_v49 = vor.u32 %v2073_v24, %v2070_v27  ;;  %v1699_v21 = vsel %vm1679_vm5, %v3986_v6, %v4977_v60 }
 0x236   : > { %v2060_v63 = vrot.slane %v2058_v16, 3  ;;  %v2063_v57 = vrot.slane %v2061_v62, 4  ;;  %v1465_v59 = vpop.permute.xlu0 %1464  ;;  %v1697_v43 = vsel %vm1679_vm5, %v3987_v42, %v4979_v8  ;;  %v1703_v8 = vsel %vm1679_vm5, %v4847_v53, %v1467_v39 }
 0x237   : > { %v2053_v36 = vrot.slane %v2051_v41, 3  ;;  %v2056_v47 = vrot.slane %v2054_v28, 4  ;;  %v5090_v60 = vsel %vm1825_vm8, %v2074_v49, %v2081_v20  ;;  %v1701_v31 = vsel %vm1679_vm5, %v4836_v46, %v1465_v59 }
 0x238   : > { %v2064_v58 = vor.u32 %v2063_v57, %v2060_v63 }
 0x239   : > { %v2057_v45 = vor.u32 %v2056_v47, %v2053_v36  ;;  %v1626_v4 = vpop.permute.xlu1 %1625 }
 0x23a   : > { %v1772_v52 = vsel %vm1752_vm6, %v1699_v21, %v1626_v4  ;;  %v1624_v7 = vpop.permute.xlu0 %1623 }
 0x23b   : > { %v1893_v12 = vshrl.u32 %v1772_v52, 16  ;;  %v1896_v13 = vshll.u32 %v1772_v52, 16  ;;  %v1770_v17 = vsel %vm1752_vm6, %v1697_v43, %v1624_v7  ;;  %v5085_v22 = vsel %vm1825_vm8, %v2057_v45, %v2064_v58 }
 0x23c   : > { %v1886_v38 = vshrl.u32 %v1770_v17, 16  ;;  %v1889_v15 = vshll.u32 %v1770_v17, 16  ;;  %3706 = vmatprep.mubr.msk.bf16.mxu1 %vm2091_vm10, %v5085_v22 }
 0x23d   : > { %v1895_v23 = vrot.slane %v1893_v12, 3  ;;  %v1898_v32 = vrot.slane %v1896_v13, 4  ;;  %v1630_v44 = vpop.permute.xlu1 %1629  ;;  %3707 = vmatmul.mubr.msk.bf16.gmra.mrb[16].mxu1 %vm2091_vm10, %v5090_v60 }
 0x23e   : > { %v1888_v35 = vrot.slane %v1886_v38, 3  ;;  %v1891_v56 = vrot.slane %v1889_v15, 4  ;;  %v1776_v27 = vsel %vm1752_vm6, %v1703_v8, %v1630_v44  ;;  %3712 = vmatprep.mubr.msk.bf16.mxu1 %vm2091_vm10, %v4812_v25  ;;  %v1628_v30 = vpop.permute.xlu0 %1627  ;;  %v2504_v25 = vsel %vm2140_vm7, %v5033_v1, 0 }
 0x23f   : > { %v1899_v54 = vor.u32 %v1898_v32, %v1895_v23  ;;  %v1908_v24 = vshrl.u32 %v1776_v27, 16  ;;  %v1911_v53 = vshll.u32 %v1776_v27, 16  ;;  %v1774_v16 = vsel %vm1752_vm6, %v1701_v31, %v1628_v30 }
 0x240   : > { %v1892_v62 = vor.u32 %v1891_v56, %v1888_v35  ;;  %v1901_v5 = vshrl.u32 %v1774_v16, 16  ;;  %v1904_v41 = vshll.u32 %v1774_v16, 16 }
 0x241   : > { %v1910_v28 = vrot.slane %v1908_v24, 3  ;;  %v1913_v39 = vrot.slane %v1911_v53, 4  ;;  %v1471_v63 = vpop.permute.xlu1 %1470 }
 0x242   : > { %v1903_v46 = vrot.slane %v1901_v5, 3  ;;  %v1906_v57 = vrot.slane %v1904_v41, 4  ;;  %v1469_v59 = vpop.permute.xlu0 %1468  ;;  %v5103_v36 = vsel %vm1825_vm8, %v1892_v62, %v1899_v54  ;;  %v1707_v21 = vsel %vm1679_vm5, %v4869_v18, %v1471_v63 }
 0x243   : > { %v1914_v47 = vor.u32 %v1913_v39, %v1910_v28  ;;  %3683 = vmatmul.mubr.msk.bf16.gmra.mrb[36].mxu0 %vm2091_vm10, %v5103_v36  ;;  %v1705_v45 = vsel %vm1679_vm5, %v4867_v14, %v1469_v59 }
 0x244   : > { %v1907_v20 = vor.u32 %v1906_v57, %v1903_v46 }
 0x245   : > { %v1475_v49 = vpop.permute.xlu1 %1474  ;;  %3713 = vmatmul.mubr.msk.bf16.vlgmr.msra.gmra.mrb[20].mxu1 %vm2091_vm10, %v4984_v10 }
 0x246   : > { %3716 = vmatprep.mubr.msk.bf16.mxu1 %vm2091_vm10, %v4990_v55  ;;  %v1473_v58 = vpop.permute.xlu0 %1472  ;;  %v5114_v6 = vsel %vm1825_vm8, %v1907_v20, %v1914_v47  ;;  %3745 = vmatpush3.bf16.msra.mxu1 %v2504_v25  ;;  %v1711_v13 = vsel %vm1679_vm5, %v4881_v33, %v1475_v49 }
 0x247   : > { %3686 = vmatprep.mubr.msk.bf16.mxu0 %vm2091_vm10, %v5114_v6  ;;  %v1709_v14 = vsel %vm1679_vm5, %v4877_v29, %v1473_v58 }
 0x249   : > { %v1634_v1 = vpop.permute.xlu1 %1633 }
 0x24a   : > { %v1780_v10 = vsel %vm1752_vm6, %v1707_v21, %v1634_v1  ;;  %v1632_v4 = vpop.permute.xlu0 %1631 }
 0x24b   : > { %v1923_v42 = vshrl.u32 %v1780_v10, 16  ;;  %v1926_v43 = vshll.u32 %v1780_v10, 16  ;;  %v1778_v52 = vsel %vm1752_vm6, %v1705_v45, %v1632_v4 }
 0x24c   : > { %v1916_v7 = vshrl.u32 %v1778_v52, 16  ;;  %v1919_v12 = vshll.u32 %v1778_v52, 16 }
 0x24d   : > { %v1925_v17 = vrot.slane %v1923_v42, 3  ;;  %v1928_v38 = vrot.slane %v1926_v43, 4  ;;  %v1638_v15 = vpop.permute.xlu1 %1637  ;;  %3717 = vmatmul.mubr.msk.bf16.gmra.mrb[24].mxu1 %vm2091_vm10, %v5009_v37 }
 0x24e   : > { %v1918_v18 = vrot.slane %v1916_v7, 3  ;;  %v1921_v8 = vrot.slane %v1919_v12, 4  ;;  %v1784_v23 = vsel %vm1752_vm6, %v1711_v13, %v1638_v15  ;;  %3720 = vmatprep.mubr.msk.bf16.mxu1 %vm2091_vm10, %v5103_v36  ;;  %v1636_v32 = vpop.permute.xlu0 %1635 }
 0x24f   : > { %v1929_v44 = vor.u32 %v1928_v38, %v1925_v17  ;;  %v1938_v31 = vshrl.u32 %v1784_v23, 16  ;;  %v1941_v33 = vshll.u32 %v1784_v23, 16  ;;  %v1782_v35 = vsel %vm1752_vm6, %v1709_v14, %v1636_v32 }
 0x250   : > { %v1922_v56 = vor.u32 %v1921_v8, %v1918_v18  ;;  %v1931_v27 = vshrl.u32 %v1782_v35, 16  ;;  %v1934_v30 = vshll.u32 %v1782_v35, 16 }
 0x251   : > { %v1940_v54 = vrot.slane %v1938_v31, 3  ;;  %v1943_v24 = vrot.slane %v1941_v33, 4  ;;  %v1479_v53 = vpop.permute.xlu1 %1478 }
 0x252   : > { %v1933_v29 = vrot.slane %v1931_v27, 3  ;;  %v1936_v16 = vrot.slane %v1934_v30, 4  ;;  %v1477_v62 = vpop.permute.xlu0 %1476  ;;  %v5135_v5 = vsel %vm1825_vm8, %v1922_v56, %v1929_v44  ;;  %v1715_v57 = vsel %vm1679_vm5, %v4901_v2, %v1479_v53 }
 0x253   : > { %v1944_v41 = vor.u32 %v1943_v24, %v1940_v54  ;;  %3687 = vmatmul.mubr.msk.bf16.gmra.mrb[40].mxu0 %vm2091_vm10, %v5135_v5  ;;  %v1713_v47 = vsel %vm1679_vm5, %v4899_v61, %v1477_v62 }
 0x254   : > { %v1937_v28 = vor.u32 %v1936_v16, %v1933_v29 }
 0x255   : > { %v1483_v39 = vpop.permute.xlu1 %1482  ;;  %3721 = vmatmul.mubr.msk.bf16.gmra.mrb[28].mxu1 %vm2091_vm10, %v5114_v6 }
 0x256   : > { %3724 = vmatprep.mubr.msk.bf16.mxu1 %vm2091_vm10, %v5135_v5  ;;  %v1481_v63 = vpop.permute.xlu0 %1480  ;;  %v5144_v46 = vsel %vm1825_vm8, %v1937_v28, %v1944_v41  ;;  %v1719_v10 = vsel %vm1679_vm5, %v4913_v11, %v1483_v39 }
 0x257   : > { %3690 = vmatprep.mubr.msk.bf16.mxu0 %vm2091_vm10, %v5144_v46  ;;  %v1717_v61 = vsel %vm1679_vm5, %v4909_v34, %v1481_v63 }
 0x259   : > { %v1642_v59 = vpop.permute.xlu1 %1641 }
 0x25a   : > { %v1788_v25 = vsel %vm1752_vm6, %v1715_v57, %v1642_v59  ;;  %v1640_v20 = vpop.permute.xlu0 %1639 }
 0x25b   : > { %v1953_v49 = vshrl.u32 %v1788_v25, 16  ;;  %v1956_v58 = vshll.u32 %v1788_v25, 16  ;;  %v1786_v21 = vsel %vm1752_vm6, %v1713_v47, %v1640_v20 }
 0x25c   : > { %v1946_v1 = vshrl.u32 %v1786_v21, 16  ;;  %v1949_v45 = vshll.u32 %v1786_v21, 16 }
 0x25d   : > { %v1955_v4 = vrot.slane %v1953_v49, 3  ;;  %v1958_v42 = vrot.slane %v1956_v58, 4  ;;  %v1646_v43 = vpop.permute.xlu1 %1645  ;;  %3725 = vmatmul.mubr.msk.bf16.gmra.mrb[32].mxu1 %vm2091_vm10, %v5144_v46 }
 0x25e   : > { %v1948_v2 = vrot.slane %v1946_v1, 3  ;;  %v1951_v52 = vrot.slane %v1949_v45, 4  ;;  %v1792_v7 = vsel %vm1752_vm6, %v1719_v10, %v1646_v43  ;;  %v1644_v12 = vpop.permute.xlu0 %1643 }
 0x25f   : > { %v1959_v13 = vor.u32 %v1958_v42, %v1955_v4  ;;  %v1968_v17 = vshrl.u32 %v1792_v7, 16  ;;  %v1971_v38 = vshll.u32 %v1792_v7, 16  ;;  %v1790_v15 = vsel %vm1752_vm6, %v1717_v61, %v1644_v12 }
 0x260   : > { %v1952_v11 = vor.u32 %v1951_v52, %v1948_v2  ;;  %v1961_v14 = vshrl.u32 %v1790_v15, 16  ;;  %v1964_v18 = vshll.u32 %v1790_v15, 16 }
 0x261   : > { %v1970_v8 = vrot.slane %v1968_v17, 3  ;;  %v1973_v23 = vrot.slane %v1971_v38, 4  ;;  %v1487_v32 = vpop.permute.xlu1 %1486 }
 0x262   : > { %v1963_v44 = vrot.slane %v1961_v14, 3  ;;  %v1966_v31 = vrot.slane %v1964_v18, 4  ;;  %v1485_v33 = vpop.permute.xlu0 %1484  ;;  %v1960_v34 = vsel %vm1825_vm8, %v1952_v11, %v1959_v13  ;;  %v1723_v27 = vsel %vm1679_vm5, %v4927_v0, %v1487_v32 }
 0x263   : > { %v1974_v35 = vor.u32 %v1973_v23, %v1970_v8  ;;  %3691 = vmatmul.mubr.msk.bf16.gmra.mrb[44].mxu0 %vm2091_vm10, %v1960_v34  ;;  %3728 = vmatprep.mubr.msk.bf16.mxu1 %vm2091_vm10, %v1960_v34  ;;  %v1721_v54 = vsel %vm1679_vm5, %v4932_v51, %v1485_v33 }
 0x264   : > { %v1967_v56 = vor.u32 %v1966_v31, %v1963_v44 }
 0x265   : > { %v1650_v30 = vpop.permute.xlu1 %1649 }
 0x266   : > { %v1796_v24 = vsel %vm1752_vm6, %v1723_v27, %v1650_v30  ;;  %v1648_v53 = vpop.permute.xlu0 %1647  ;;  %v1975_v29 = vsel %vm1825_vm8, %v1967_v56, %v1974_v35 }
 0x267   : > { %v1983_v16 = vshrl.u32 %v1796_v24, 16  ;;  %v1986_v62 = vshll.u32 %v1796_v24, 16  ;;  %v1794_v41 = vsel %vm1752_vm6, %v1721_v54, %v1648_v53  ;;  %3694 = vmatprep.mubr.msk.bf16.mxu0 %vm2091_vm10, %v1975_v29  ;;  %3729 = vmatmul.mubr.msk.bf16.gmra.mrb[36].mxu1 %vm2091_vm10, %v1975_v29 }
 0x268   : > { %v1976_v28 = vshrl.u32 %v1794_v41, 16  ;;  %v1979_v39 = vshll.u32 %v1794_v41, 16 }
 0x269   : > { %v1985_v0 = vrot.slane %v1983_v16, 3  ;;  %v1988_v63 = vrot.slane %v1986_v62, 4 }
 0x26a   : > { %v1978_v57 = vrot.slane %v1976_v28, 3  ;;  %v1981_v59 = vrot.slane %v1979_v39, 4 }
 0x26b   : > { %v1989_v51 = vor.u32 %v1988_v63, %v1985_v0 }
 0x26c   : > { %v1982_v47 = vor.u32 %v1981_v59, %v1978_v57 }
 0x26e   : > { %v1990_v25 = vsel %vm1825_vm8, %v1982_v47, %v1989_v51 }
 0x26f   : > { %3695 = vmatmul.mubr.msk.bf16.gmra.mrb[48].mxu0 %vm2091_vm10, %v1990_v25  ;;  %3732 = vmatprep.mubr.msk.bf16.mxu1 %vm2091_vm10, %v1990_v25 }
 0x270   : > { %3733 = vmatmul.mubr.msk.bf16.gmra.mrb[8].mxu1 %vm2091_vm10, %v5026_v48 }
 0x271   : > { %3736 = vmatprep.mubr.msk.bf16.mxu1 %vm2091_vm10, %v5038_v3 }
 0x278   : > { %3737 = vmatmul.mubr.msk.bf16.gmra.mrb[12].mxu1 %vm2091_vm10, %v5057_v40 }
 0x279   : > { %3740 = vmatprep.mubr.msk.bf16.mxu1 %vm2091_vm10, %v5062_v50  ;;  %v935_v20 = vpop.f32.mrb[0].mxu1 }
 0x27a   : > { %v3668_v49 = vpop.f32.mrb[1].mxu1 }
 0x27b   : > { %v938_v58 = vpop.f32.mrb[2].mxu1 }
 0x27c   : > { %v3669_v21 = vpop.f32.mrb[3].mxu1 }
 0x280   : > { %3741 = vmatmul.mubr.msk.bf16.gmra.mrb[16].mxu1 %vm2091_vm10, %v5085_v22 }
 0x281   : > { %3746 = vmatprep.mubr.msk.bf16.mxu1 %vm2091_vm10, %v4990_v55  ;;  %v995_v1 = vpop.f32.mrb[4].mxu1  ;;  %v1515_v55 = vpop.permute.xlu1 %1514 }
 0x282   : > { %v3674_v45 = vpop.f32.mrb[5].mxu1 }
 0x283   : > { %v998_v10 = vpop.f32.mrb[6].mxu1 }
 0x284   : > { %v3675_v4 = vpop.f32.mrb[7].mxu1 }
 0x288   : > { %3747 = vmatmul.mubr.msk.bf16.vlgmr.msra.gmra.mrb[20].mxu1 %vm2091_vm10, %v5009_v37  ;;  %v1513_v37 = vpop.permute.xlu0 %1512 }
 0x289   : > { %3750 = vmatprep.mubr.msk.bf16.mxu1 %vm2091_vm10, %v5103_v36  ;;  %v1751_v36 = vsel %vm1679_vm5, %v4956_v9, %v1515_v55 }
 0x290   : > { %3751 = vmatmul.mubr.msk.bf16.gmra.mrb[24].mxu1 %vm2091_vm10, %v5114_v6  ;;  %v1749_v6 = vsel %vm1679_vm5, %v4948_v26, %v1513_v37 }
 0x291   : > { %3754 = vmatprep.mubr.msk.bf16.mxu1 %vm2091_vm10, %v5135_v5  ;;  %v1678_v5 = vpop.permute.xlu1 %1677 }
 0x292   : > { %v1824_v42 = vsel %vm1752_vm6, %v1751_v36, %v1678_v5 }
 0x298   : > { %3755 = vmatmul.mubr.msk.bf16.gmra.mrb[28].mxu1 %vm2091_vm10, %v5144_v46  ;;  %v1676_v46 = vpop.permute.xlu0 %1675 }
 0x299   : > { %3758 = vmatprep.mubr.msk.bf16.mxu1 %vm2091_vm10, %v1960_v34  ;;  %v1822_v43 = vsel %vm1752_vm6, %v1749_v6, %v1676_v46 }
 0x29a   : > { %v2477_v61 = vshrl.u32 %v1822_v43, 16  ;;  %v2480_v2 = vshll.u32 %v1822_v43, 16 }
 0x29c   : > { %v2479_v7 = vrot.slane %v2477_v61, 3  ;;  %v2482_v26 = vrot.slane %v2480_v2, 4 }
 0x29e   : > { %v2483_v13 = vor.u32 %v2482_v26, %v2479_v7 }
 0x2a0   : > { %3759 = vmatmul.mubr.msk.bf16.gmra.mrb[32].mxu1 %vm2091_vm10, %v1975_v29  ;;  %v5244_v29 = vld [vmem:[%s5502_s6] ss:$0 sm:$0xff] }
 0x2a1   : > { %3762 = vmatprep.mubr.msk.bf16.mxu1 %vm2091_vm10, %v1990_v25 }
 0x2a8   : > { %3763 = vmatmul.mubr.msk.bf16.gmra.mrb[36].mxu1 %vm2091_vm10, %v5026_v48  ;;  %v2484_v48 = vshrl.u32 %v1824_v42, 16 }
 0x2a9   : > { %3766 = vmatprep.mubr.msk.bf16.mxu1 %vm2091_vm10, %v5038_v3  ;;  %v2487_v3 = vshll.u32 %v1824_v42, 16 }
 0x2aa   : > { %v2486_v9 = vrot.slane %v2484_v48, 3 }
 0x2ab   : > { %v2489_v52 = vrot.slane %v2487_v3, 4 }
 0x2ad   : > { %v2490_v12 = vor.u32 %v2489_v52, %v2486_v9 }
 0x2af   : > { %v2491_v17 = vsel %vm1825_vm8, %v2483_v13, %v2490_v12 }
 0x2b0   : > { %3767 = vmatmul.mubr.msk.bf16.gmra.mrb[8].mxu1 %vm2091_vm10, %v5057_v40  ;;  %v2786_v40 = vld [vmem:[%s5503_s7] sm:$0x3] }
 0x2b1   : > { %3770 = vmatprep.mubr.msk.bf16.mxu1 %vm2091_vm10, %v5062_v50  ;;  %3882 = vmatprep.subr.msk.bf16.mxu0 %vm2842_vm11, %v2786_v40  ;;  %v2844_v50 = vsel %vm2842_vm11, %v2786_v40, 0 }
 0x2b2   : > { %3779 = vmatpush3.bf16.msra.mxu0 %v2844_v50 }
 0x2b8   : > { %3771 = vmatmul.mubr.msk.bf16.gmra.mrb[12].mxu1 %vm2091_vm10, %v5085_v22 }
 0x2b9   : > { %3774 = vmatprep.mubr.msk.bf16.mxu1 %vm2091_vm10, %v5090_v60 }
 0x2c0   : > { %3775 = vmatmul.mubr.msk.bf16.gmra.mrb[16].mxu1 %vm2091_vm10, %v2491_v17 }
 0x2c8   : > { %v3680_v38 = vpop.f32.mrb[32].mxu0 }
 0x2c9   : > { %v2178_v15 = vpop.f32.mrb[33].mxu0 }
 0x2ca   : > { %v3681_v22 = vpop.f32.mrb[34].mxu0 }
 0x2cb   : > { %v2181_v11 = vpop.f32.mrb[35].mxu0 }
 0x316   : > { %v3684_v14 = vpop.f32.mrb[36].mxu0 }
 0x317   : > { %v2194_v18 = vpop.f32.mrb[37].mxu0 }
 0x318   : > { %v3685_v8 = vpop.f32.mrb[38].mxu0 }
 0x319   : > { %v2197_v60 = vpop.f32.mrb[39].mxu0 }
 0x326   : > { %v3688_v23 = vpop.f32.mrb[40].mxu0 }
 0x327   : > { %v2210_v32 = vpop.f32.mrb[41].mxu0 }
 0x328   : > { %v3689_v44 = vpop.f32.mrb[42].mxu0 }
 0x329   : > { %v2213_v31 = vpop.f32.mrb[43].mxu0 }
 0x336   : > { %v5225_v33 = vpop.f32.mrb[44].mxu0 }
 0x337   : > { %v5227_v34 = vpop.f32.mrb[45].mxu0 }
 0x338   : > { %v5229_v35 = vpop.f32.mrb[46].mxu0 }
 0x339   : > { %v5231_v56 = vpop.f32.mrb[47].mxu0 }
 0x342   : > { %v5233_v27 = vpop.f32.mrb[48].mxu0 }
 0x343   : > { %v5235_v30 = vpop.f32.mrb[49].mxu0 }
 0x344   : > { %v5237_v54 = vpop.f32.mrb[50].mxu0 }
 0x345   : > { %v5239_v24 = vpop.f32.mrb[51].mxu0 }
 0x35b   : > { %v3748_v53 = vpop.f32.mrb[20].mxu1 }
 0x35c   : > { %v3814_v16 = vadd.f32 %v3748_v53, %v3680_v38  ;;  %v2540_v62 = vpop.f32.mrb[21].mxu1 }
 0x35d   : > { %v3815_v41 = vadd.f32 %v2540_v62, %v2178_v15  ;;  %v3749_v28 = vpop.f32.mrb[22].mxu1 }
 0x35e   : > { %v2708_v39 = vadd.f32 %v3814_v16, %v5244_v29  ;;  %v3816_v0 = vadd.f32 %v3749_v28, %v3681_v22  ;;  %v2543_v63 = vpop.f32.mrb[23].mxu1 }
 0x35f   : > { %v2706_v57 = vadd.f32 %v3815_v41, %v5244_v29  ;;  %v3817_v59 = vadd.f32 %v2543_v63, %v2181_v11 }
 0x360   : > { %v2709_v51 = vadd.f32 %v3816_v0, %v5244_v29  ;;  %v2740_v25 = vmax.f32 %v2708_v39, 0.0 }
 0x361   : > { %v2707_v47 = vadd.f32 %v3817_v59, %v5244_v29  ;;  %v2738_v49 = vmax.f32 %v2706_v57, 0.0 }
 0x362   : > { %v2741_v20 = vmax.f32 %v2709_v51, 0.0 }
 0x363   : > { %v2739_v58 = vmax.f32 %v2707_v47, 0.0  ;;  %v3752_v21 = vpop.f32.mrb[24].mxu1 }
 0x364   : > { %v2771_v1 = vpack.c.bf16 %v2741_v20, %v2740_v25  ;;  %v3818_v45 = vadd.f32 %v3752_v21, %v3684_v14  ;;  %v2556_v10 = vpop.f32.mrb[25].mxu1 }
 0x365   : > { %v2770_v4 = vpack.c.bf16 %v2739_v58, %v2738_v49  ;;  %v3819_v55 = vadd.f32 %v2556_v10, %v2194_v18  ;;  %v3753_v37 = vpop.f32.mrb[26].mxu1 }
 0x366   : > { %v2712_v36 = vadd.f32 %v3818_v45, %v5244_v29  ;;  %v3820_v6 = vadd.f32 %v3753_v37, %v3685_v8  ;;  %v2559_v5 = vpop.f32.mrb[27].mxu1 }
 0x367   : > { %v2710_v46 = vadd.f32 %v3819_v55, %v5244_v29  ;;  %v3821_v42 = vadd.f32 %v2559_v5, %v2197_v60  ;;  %3780 = vmatprep.mubr.msk.bf16.mxu0 %vm1679_vm5, %v2770_v4 }
 0x368   : > { %v2713_v43 = vadd.f32 %v3820_v6, %v5244_v29  ;;  %3781 = vmatmul.mubr.msk.bf16.vlgmr.msra.gmra.mrb[52].mxu0 %vm1679_vm5, %v2771_v1  ;;  %v2744_v3 = vmax.f32 %v2712_v36, 0.0 }
 0x369   : > { %v2711_v48 = vadd.f32 %v3821_v42, %v5244_v29  ;;  %v2742_v2 = vmax.f32 %v2710_v46, 0.0 }
 0x36a   : > { %v2745_v61 = vmax.f32 %v2713_v43, 0.0 }
 0x36b   : > { %v2743_v9 = vmax.f32 %v2711_v48, 0.0  ;;  %v3756_v52 = vpop.f32.mrb[28].mxu1 }
 0x36c   : > { %v2773_v7 = vpack.c.bf16 %v2745_v61, %v2744_v3  ;;  %v3822_v26 = vadd.f32 %v3756_v52, %v3688_v23  ;;  %v2572_v12 = vpop.f32.mrb[29].mxu1 }
 0x36d   : > { %v2772_v13 = vpack.c.bf16 %v2743_v9, %v2742_v2  ;;  %v3823_v40 = vadd.f32 %v2572_v12, %v2210_v32  ;;  %v3757_v50 = vpop.f32.mrb[30].mxu1 }
 0x36e   : > { %v2716_v17 = vadd.f32 %v3822_v26, %v5244_v29  ;;  %v3824_v38 = vadd.f32 %v3757_v50, %v3689_v44  ;;  %v2575_v15 = vpop.f32.mrb[31].mxu1 }
 0x36f   : > { %v2714_v22 = vadd.f32 %v3823_v40, %v5244_v29  ;;  %v3825_v11 = vadd.f32 %v2575_v15, %v2213_v31  ;;  %3784 = vmatprep.mubr.msk.bf16.mxu0 %vm1679_vm5, %v2772_v13 }
 0x370   : > { %v2717_v14 = vadd.f32 %v3824_v38, %v5244_v29  ;;  %3785 = vmatmul.mubr.msk.bf16.gmra.mrb[56].mxu0 %vm1679_vm5, %v2773_v7  ;;  %v2748_v8 = vmax.f32 %v2716_v17, 0.0 }
 0x371   : > { %v2715_v18 = vadd.f32 %v3825_v11, %v5244_v29  ;;  %v2746_v23 = vmax.f32 %v2714_v22, 0.0 }
 0x372   : > { %v2749_v60 = vmax.f32 %v2717_v14, 0.0 }
 0x373   : > { %v2747_v32 = vmax.f32 %v2715_v18, 0.0  ;;  %v3760_v53 = vpop.f32.mrb[32].mxu1 }
 0x374   : > { %v2775_v16 = vpack.c.bf16 %v2749_v60, %v2748_v8  ;;  %v3826_v44 = vadd.f32 %v3760_v53, %v5225_v33  ;;  %v2588_v62 = vpop.f32.mrb[33].mxu1 }
 0x375   : > { %v2774_v41 = vpack.c.bf16 %v2747_v32, %v2746_v23  ;;  %v3827_v31 = vadd.f32 %v2588_v62, %v5227_v34  ;;  %v3761_v28 = vpop.f32.mrb[34].mxu1 }
 0x376   : > { %v2720_v39 = vadd.f32 %v3826_v44, %v5244_v29  ;;  %v3828_v0 = vadd.f32 %v3761_v28, %v5229_v35  ;;  %v2591_v63 = vpop.f32.mrb[35].mxu1 }
 0x377   : > { %v2718_v57 = vadd.f32 %v3827_v31, %v5244_v29  ;;  %v3829_v59 = vadd.f32 %v2591_v63, %v5231_v56  ;;  %3788 = vmatprep.mubr.msk.bf16.mxu0 %vm1679_vm5, %v2774_v41 }
 0x378   : > { %v2721_v51 = vadd.f32 %v3828_v0, %v5244_v29  ;;  %3789 = vmatmul.mubr.msk.bf16.gmra.mrb[60].mxu0 %vm1679_vm5, %v2775_v16  ;;  %v2752_v47 = vmax.f32 %v2720_v39, 0.0 }
 0x379   : > { %v2719_v33 = vadd.f32 %v3829_v59, %v5244_v29  ;;  %v2750_v25 = vmax.f32 %v2718_v57, 0.0 }
 0x37a   : > { %v2753_v34 = vmax.f32 %v2721_v51, 0.0 }
 0x37b   : > { %v2751_v20 = vmax.f32 %v2719_v33, 0.0  ;;  %v3764_v49 = vpop.f32.mrb[36].mxu1 }
 0x37c   : > { %v2777_v58 = vpack.c.bf16 %v2753_v34, %v2752_v47  ;;  %v3830_v35 = vadd.f32 %v3764_v49, %v5233_v27  ;;  %v2604_v21 = vpop.f32.mrb[37].mxu1 }
 0x37d   : > { %v2776_v1 = vpack.c.bf16 %v2751_v20, %v2750_v25  ;;  %v3831_v56 = vadd.f32 %v2604_v21, %v5235_v30  ;;  %v3765_v45 = vpop.f32.mrb[38].mxu1 }
 0x37e   : > { %v2724_v10 = vadd.f32 %v3830_v35, %v5244_v29  ;;  %v3832_v4 = vadd.f32 %v3765_v45, %v5237_v54  ;;  %v2607_v55 = vpop.f32.mrb[39].mxu1 }
 0x37f   : > { %v2722_v37 = vadd.f32 %v3831_v56, %v5244_v29  ;;  %v3833_v36 = vadd.f32 %v2607_v55, %v5239_v24  ;;  %3792 = vmatprep.mubr.msk.bf16.mxu0 %vm1679_vm5, %v2776_v1 }
 0x380   : > { %v2725_v6 = vadd.f32 %v3832_v4, %v5244_v29  ;;  %3793 = vmatmul.mubr.msk.bf16.gmra.mrb[64].mxu0 %vm1679_vm5, %v2777_v58  ;;  %v2756_v5 = vmax.f32 %v2724_v10, 0.0  ;;  %v5305_v58 = vld [vmem:[%s5504_s8] ss:$0 sm:$0xff] }
 0x381   : > { %v2723_v27 = vadd.f32 %v3833_v36, %v5244_v29  ;;  %v2754_v46 = vmax.f32 %v2722_v37, 0.0  ;;  %v3988_v37 = vld [vmem:[%s4466_s22 + $0x8] sm:$0xff]  }
 0x382   : > { %v2757_v30 = vmax.f32 %v2725_v6, 0.0  ;;  %v3989_v6 = vld [vmem:[%s4466_s22] sm:$0xff]  }
 0x383   : > { %v2755_v42 = vmax.f32 %v2723_v27, 0.0  ;;  %v3768_v43 = vpop.f32.mrb[8].mxu1 }
 0x384   : > { %v2779_v48 = vpack.c.bf16 %v2757_v30, %v2756_v5  ;;  %v2728_v54 = vadd.f32 %v3768_v43, %v5244_v29  ;;  %v2620_v3 = vpop.f32.mrb[9].mxu1 }
 0x385   : > { %v2778_v61 = vpack.c.bf16 %v2755_v42, %v2754_v46  ;;  %v2726_v24 = vadd.f32 %v5244_v29, %v2620_v3  ;;  %v3769_v2 = vpop.f32.mrb[10].mxu1 }
 0x386   : > { %v2729_v9 = vadd.f32 %v3769_v2, %v5244_v29  ;;  %v2623_v52 = vpop.f32.mrb[11].mxu1  ;;  %v2760_v26 = vmax.f32 %v2728_v54, 0.0 }
 0x387   : > { %v2727_v7 = vadd.f32 %v5244_v29, %v2623_v52  ;;  %3796 = vmatprep.mubr.msk.bf16.mxu0 %vm1679_vm5, %v2778_v61  ;;  %v2758_v13 = vmax.f32 %v2726_v24, 0.0 }
 0x388   : > { %v2761_v12 = vmax.f32 %v2729_v9, 0.0  ;;  %3797 = vmatmul.mubr.msk.bf16.gmra.mrb[68].mxu0 %vm1679_vm5, %v2779_v48 }
 0x389   : > { %v2759_v40 = vmax.f32 %v2727_v7, 0.0 }
 0x38a   : > { %v2781_v50 = vpack.c.bf16 %v2761_v12, %v2760_v26 }
 0x38b   : > { %v2780_v17 = vpack.c.bf16 %v2759_v40, %v2758_v13  ;;  %v3772_v38 = vpop.f32.mrb[12].mxu1  ;;  %v3990_v13 = vld [vmem:[%s4466_s22 + $0x18] sm:$0xff]  }
 0x38c   : > { %v2732_v15 = vadd.f32 %v3772_v38, %v5244_v29  ;;  %v2636_v22 = vpop.f32.mrb[13].mxu1 }
 0x38d   : > { %v2730_v11 = vadd.f32 %v5244_v29, %v2636_v22  ;;  %v3773_v14 = vpop.f32.mrb[14].mxu1  ;;  %3800 = vmatprep.mubr.msk.bf16.mxu0 %vm1679_vm5, %v2780_v17 }
 0x38e   : > { %v2733_v18 = vadd.f32 %v3773_v14, %v5244_v29  ;;  %v2639_v8 = vpop.f32.mrb[15].mxu1  ;;  %v2764_v23 = vmax.f32 %v2732_v15, 0.0 }
 0x38f   : > { %v2731_v60 = vadd.f32 %v5244_v29, %v2639_v8  ;;  %v2762_v53 = vmax.f32 %v2730_v11, 0.0 }
 0x390   : > { %v2765_v32 = vmax.f32 %v2733_v18, 0.0  ;;  %3801 = vmatmul.mubr.msk.bf16.gmra.mrb[72].mxu0 %vm1679_vm5, %v2781_v50  ;;  %v3991_v50 = vld [vmem:[%s4466_s22 + $0x10] sm:$0xff]  }
 0x391   : > { %v2763_v16 = vmax.f32 %v2731_v60, 0.0 }
 0x392   : > { %v2783_v44 = vpack.c.bf16 %v2765_v32, %v2764_v23 }
 0x393   : > { %v2782_v62 = vpack.c.bf16 %v2763_v16, %v2762_v53  ;;  %v3776_v41 = vpop.f32.mrb[16].mxu1 }
 0x394   : > { %v2736_v31 = vadd.f32 %v3776_v41, %v5244_v29  ;;  %v2652_v28 = vpop.f32.mrb[17].mxu1 }
 0x395   : > { %v2734_v39 = vadd.f32 %v5244_v29, %v2652_v28  ;;  %v3777_v0 = vpop.f32.mrb[18].mxu1  ;;  %3804 = vmatprep.mubr.msk.bf16.mxu0 %vm1679_vm5, %v2782_v62  ;;  %v3992_v28 = vld [vmem:[%s4466_s22 + $0x28] sm:$0xff]  }
 0x396   : > { %v2737_v63 = vadd.f32 %v3777_v0, %v5244_v29  ;;  %v2655_v57 = vpop.f32.mrb[19].mxu1  ;;  %v2768_v51 = vmax.f32 %v2736_v31, 0.0  ;;  %v3993_v0 = vld [vmem:[%s4466_s22 + $0x20] sm:$0xff]  }
 0x397   : > { %v2735_v59 = vadd.f32 %v5244_v29, %v2655_v57  ;;  %v2766_v47 = vmax.f32 %v2734_v39, 0.0 }
 0x398   : > { %v2769_v33 = vmax.f32 %v2737_v63, 0.0  ;;  %3805 = vmatmul.mubr.msk.bf16.gmra.mrb[76].mxu0 %vm1679_vm5, %v2783_v44 }
 0x399   : > { %v2767_v34 = vmax.f32 %v2735_v59, 0.0 }
 0x39a   : > { %v2785_v25 = vpack.c.bf16 %v2769_v33, %v2768_v51 }
 0x39b   : > { %v2784_v20 = vpack.c.bf16 %v2767_v34, %v2766_v47 }
 0x39d   : > { %3808 = vmatprep.mubr.msk.bf16.mxu0 %vm1679_vm5, %v2784_v20 }
 0x3a0   : > { %3809 = vmatmul.mubr.msk.bf16.gmra.mrb[80].mxu0 %vm1679_vm5, %v2785_v25 }
 0x43b   : > { %v3782_v49 = vpop.f32.mrb[52].mxu0 }
 0x43c   : > { %v2880_v29 = vpop.f32.mrb[53].mxu0  ;;  %v2889_v21 = vadd.f32 %v3782_v49, %v5305_v58 }
 0x43d   : > { %v3783_v35 = vpop.f32.mrb[54].mxu0  ;;  %v2881_v45 = vadd.f32 %v5305_v58, %v2880_v29 }
 0x43e   : > { %v2892_v1 = vadd.f32 %v3783_v35, %v5305_v58  ;;  %v2883_v56 = vpop.f32.mrb[55].mxu0 }
 0x43f   : > { %v2884_v10 = vadd.f32 %v5305_v58, %v2883_v56 }
 0x440   : > { %v3008_v4 = vpack.c.bf16 %v2892_v1, %v2889_v21 }
 0x441   : > { %v3007_v55 = vpack.c.bf16 %v2884_v10, %v2881_v45 }
 0x442   : > { %v3040_v36 = vadd.bf16 %v3988_v37, %v3008_v4  ;;  %v3994_v4 = vld [vmem:[%s4466_s22 + $0x38] sm:$0xff]   ;;  %v3995_v37 = vld [vmem:[%s4466_s22 + $0x30] sm:$0xff]  }
 0x443   : > { %v3039_v27 = vadd.bf16 %v3989_v6, %v3007_v55  ;;  %v3786_v5 = vpop.f32.mrb[56].mxu0 }
 0x444   : > { %v3056_v30 = vmax.bf16 %v4188_v19, %v3040_v36  ;;  %v2896_v46 = vpop.f32.mrb[57].mxu0  ;;  %v2905_v3 = vadd.f32 %v3786_v5, %v5305_v58 }
 0x445   : > { %v3055_v42 = vmax.bf16 %v4188_v19, %v3039_v27  ;;  %v3787_v43 = vpop.f32.mrb[58].mxu0  ;;  %v2897_v52 = vadd.f32 %v5305_v58, %v2896_v46 }
 0x446   : > { %v3500_v48 = vcombine.low %v3056_v30, %v3056_v30  ;;  %v3501_v54 = vcombine.high %v3056_v30, %v3056_v30  ;;  %v2908_v61 = vadd.f32 %v3787_v43, %v5305_v58  ;;  %v2899_v24 = vpop.f32.mrb[59].mxu0 }
 0x447   : > { %v3498_v2 = vcombine.low %v3055_v42, %v3055_v42  ;;  %v3499_v9 = vcombine.high %v3055_v42, %v3055_v42  ;;  %v2900_v7 = vadd.f32 %v5305_v58, %v2899_v24 }
 0x448   : > { %3186 = vst.msk [vmem:[%s5321_s1 + $0x8] sm:$0xf] %vm3183_vm12, %v3500_v48  ;;  %3187 = vst.msk [vmem:[%s5321_s1 + $0xc] sm:$0xf] %vm3183_vm12, %v3501_v54  ;;  %v3010_v26 = vpack.c.bf16 %v2908_v61, %v2905_v3 }
 0x449   : > { %3184 = vst.msk [vmem:[%s5321_s1] sm:$0xf] %vm3183_vm12, %v3498_v2  ;;  %3185 = vst.msk [vmem:[%s5321_s1 + $0x4] sm:$0xf] %vm3183_vm12, %v3499_v9  ;;  %v3009_v12 = vpack.c.bf16 %v2900_v7, %v2897_v52 }
 0x44a   : > { %v3042_v40 = vadd.bf16 %v3990_v13, %v3010_v26  ;;  %v3996_v26 = vld [vmem:[%s4466_s22 + $0x48] sm:$0xff]   ;;  %v3997_v13 = vld [vmem:[%s4466_s22 + $0x40] sm:$0xff]  }
 0x44b   : > { %v3041_v17 = vadd.bf16 %v3991_v50, %v3009_v12  ;;  %v3790_v38 = vpop.f32.mrb[60].mxu0 }
 0x44c   : > { %v3058_v15 = vmax.bf16 %v4188_v19, %v3042_v40  ;;  %v2912_v22 = vpop.f32.mrb[61].mxu0  ;;  %v2921_v60 = vadd.f32 %v3790_v38, %v5305_v58 }
 0x44d   : > { %v3057_v11 = vmax.bf16 %v4188_v19, %v3041_v17  ;;  %v3791_v14 = vpop.f32.mrb[62].mxu0  ;;  %v2913_v44 = vadd.f32 %v5305_v58, %v2912_v22 }
 0x44e   : > { %v3504_v18 = vcombine.low %v3058_v15, %v3058_v15  ;;  %v3505_v8 = vcombine.high %v3058_v15, %v3058_v15  ;;  %v2924_v23 = vadd.f32 %v3791_v14, %v5305_v58  ;;  %v2915_v32 = vpop.f32.mrb[63].mxu0 }
 0x44f   : > { %v3502_v53 = vcombine.low %v3057_v11, %v3057_v11  ;;  %v3503_v16 = vcombine.high %v3057_v11, %v3057_v11  ;;  %v2916_v62 = vadd.f32 %v5305_v58, %v2915_v32 }
 0x450   : > { %3190 = vst.msk [vmem:[%s5321_s1 + $0x18] sm:$0xf] %vm3183_vm12, %v3504_v18  ;;  %3191 = vst.msk [vmem:[%s5321_s1 + $0x1c] sm:$0xf] %vm3183_vm12, %v3505_v8  ;;  %v3012_v41 = vpack.c.bf16 %v2924_v23, %v2921_v60 }
 0x451   : > { %3188 = vst.msk [vmem:[%s5321_s1 + $0x10] sm:$0xf] %vm3183_vm12, %v3502_v53  ;;  %3189 = vst.msk [vmem:[%s5321_s1 + $0x14] sm:$0xf] %vm3183_vm12, %v3503_v16  ;;  %v3011_v31 = vpack.c.bf16 %v2916_v62, %v2913_v44 }
 0x452   : > { %v3044_v39 = vadd.bf16 %v3992_v28, %v3012_v41  ;;  %v3998_v41 = vld [vmem:[%s4466_s22 + $0x58] sm:$0xff]   ;;  %v3999_v28 = vld [vmem:[%s4466_s22 + $0x50] sm:$0xff]  }
 0x453   : > { %v3043_v63 = vadd.bf16 %v3993_v0, %v3011_v31  ;;  %v3794_v57 = vpop.f32.mrb[64].mxu0 }
 0x454   : > { %v3060_v59 = vmax.bf16 %v4188_v19, %v3044_v39  ;;  %v2928_v51 = vpop.f32.mrb[65].mxu0  ;;  %v2937_v20 = vadd.f32 %v3794_v57, %v5305_v58 }
 0x455   : > { %v3059_v33 = vmax.bf16 %v4188_v19, %v3043_v63  ;;  %v3795_v47 = vpop.f32.mrb[66].mxu0  ;;  %v2929_v1 = vadd.f32 %v5305_v58, %v2928_v51 }
 0x456   : > { %v3508_v34 = vcombine.low %v3060_v59, %v3060_v59  ;;  %v3509_v25 = vcombine.high %v3060_v59, %v3060_v59  ;;  %v2940_v49 = vadd.f32 %v3795_v47, %v5305_v58  ;;  %v2931_v29 = vpop.f32.mrb[67].mxu0 }
 0x457   : > { %v3506_v35 = vcombine.low %v3059_v33, %v3059_v33  ;;  %v3507_v21 = vcombine.high %v3059_v33, %v3059_v33  ;;  %v2932_v56 = vadd.f32 %v5305_v58, %v2931_v29 }
 0x458   : > { %3194 = vst.msk [vmem:[%s5321_s1 + $0x28] sm:$0xf] %vm3183_vm12, %v3508_v34  ;;  %3195 = vst.msk [vmem:[%s5321_s1 + $0x2c] sm:$0xf] %vm3183_vm12, %v3509_v25  ;;  %v3014_v45 = vpack.c.bf16 %v2940_v49, %v2937_v20 }
 0x459   : > { %3192 = vst.msk [vmem:[%s5321_s1 + $0x20] sm:$0xf] %vm3183_vm12, %v3506_v35  ;;  %3193 = vst.msk [vmem:[%s5321_s1 + $0x24] sm:$0xf] %vm3183_vm12, %v3507_v21  ;;  %v3013_v10 = vpack.c.bf16 %v2932_v56, %v2929_v1 }
 0x45a   : > { %v3046_v55 = vadd.bf16 %v3994_v4, %v3014_v45  ;;  %v4000_v45 = vld [vmem:[%s4466_s22 + $0x68] sm:$0xff]   ;;  %v4001_v4 = vld [vmem:[%s4466_s22 + $0x60] sm:$0xff]  }
 0x45b   : > { %v3045_v36 = vadd.bf16 %v3995_v37, %v3013_v10  ;;  %v3798_v6 = vpop.f32.mrb[68].mxu0 }
 0x45c   : > { %v3062_v27 = vmax.bf16 %v4188_v19, %v3046_v55  ;;  %v2944_v5 = vpop.f32.mrb[69].mxu0  ;;  %v2953_v48 = vadd.f32 %v3798_v6, %v5305_v58 }
 0x45d   : > { %v3061_v30 = vmax.bf16 %v4188_v19, %v3045_v36  ;;  %v3799_v46 = vpop.f32.mrb[70].mxu0  ;;  %v2945_v2 = vadd.f32 %v5305_v58, %v2944_v5 }
 0x45e   : > { %v3512_v42 = vcombine.low %v3062_v27, %v3062_v27  ;;  %v3513_v43 = vcombine.high %v3062_v27, %v3062_v27  ;;  %v2956_v54 = vadd.f32 %v3799_v46, %v5305_v58  ;;  %v2947_v3 = vpop.f32.mrb[71].mxu0 }
 0x45f   : > { %v3510_v61 = vcombine.low %v3061_v30, %v3061_v30  ;;  %v3511_v24 = vcombine.high %v3061_v30, %v3061_v30  ;;  %v2948_v9 = vadd.f32 %v5305_v58, %v2947_v3 }
 0x460   : > { %3198 = vst.msk [vmem:[%s5321_s1 + $0x38] sm:$0xf] %vm3183_vm12, %v3512_v42  ;;  %3199 = vst.msk [vmem:[%s5321_s1 + $0x3c] sm:$0xf] %vm3183_vm12, %v3513_v43  ;;  %v3016_v52 = vpack.c.bf16 %v2956_v54, %v2953_v48 }
 0x461   : > { %3196 = vst.msk [vmem:[%s5321_s1 + $0x30] sm:$0xf] %vm3183_vm12, %v3510_v61  ;;  %3197 = vst.msk [vmem:[%s5321_s1 + $0x34] sm:$0xf] %vm3183_vm12, %v3511_v24  ;;  %v3015_v7 = vpack.c.bf16 %v2948_v9, %v2945_v2 }
 0x462   : > { %v3048_v12 = vadd.bf16 %v3996_v26, %v3016_v52  ;;  %v4002_v52 = vld [vmem:[%s4466_s22 + $0x78] sm:$0xff]   ;;  %v4003_v26 = vld [vmem:[%s4466_s22 + $0x70] sm:$0xff]   ;;  %s4094_s22 = scalar_lea.vmem %s5438_s25, 2048 }
 0x463   : > { %v3047_v40 = vadd.bf16 %v3997_v13, %v3015_v7  ;;  %v3802_v50 = vpop.f32.mrb[72].mxu0  ;;  %p4095_p0 = scmp.ne.s32.totalorder %s5438_s25, %s4094_s22  ;;  %p4102_p1 = scmp.lt.s32.totalorder %s4100_s16, %s4094_s22 }
 0x464   : > { %v3064_v17 = vmax.bf16 %v4188_v19, %v3048_v12  ;;  %v2960_v38 = vpop.f32.mrb[73].mxu0  ;;  %v2969_v18 = vadd.f32 %v3802_v50, %v5305_v58 }
 0x465   : > { %v3063_v15 = vmax.bf16 %v4188_v19, %v3047_v40  ;;  %v3803_v22 = vpop.f32.mrb[74].mxu0  ;;  %v2961_v53 = vadd.f32 %v5305_v58, %v2960_v38  ;;  %p4096_p8 = pnand %p4095_p0, %p5549_p10  ;;  %p4103_p6 = por %p4102_p1, %p4101_p12 }
 0x466   : > { %v3516_v11 = vcombine.low %v3064_v17, %v3064_v17  ;;  %v3517_v14 = vcombine.high %v3064_v17, %v3064_v17  ;;  %v2972_v8 = vadd.f32 %v3803_v22, %v5305_v58  ;;  %v2963_v60 = vpop.f32.mrb[75].mxu0 }
 0x467   : > { %v3514_v23 = vcombine.low %v3063_v15, %v3063_v15  ;;  %v3515_v32 = vcombine.high %v3063_v15, %v3063_v15  ;;  %v2964_v16 = vadd.f32 %v5305_v58, %v2963_v60  ;;  %p4097_p9 = pneg %p4096_p8 }
 0x468   : > { %3202 = vst.msk [vmem:[%s5321_s1 + $0x48] sm:$0xf] %vm3183_vm12, %v3516_v11  ;;  %3203 = vst.msk [vmem:[%s5321_s1 + $0x4c] sm:$0xf] %vm3183_vm12, %v3517_v14  ;;  %v3018_v44 = vpack.c.bf16 %v2972_v8, %v2969_v18 }
 0x469   : > { %3200 = vst.msk [vmem:[%s5321_s1 + $0x40] sm:$0xf] %vm3183_vm12, %v3514_v23  ;;  %3201 = vst.msk [vmem:[%s5321_s1 + $0x44] sm:$0xf] %vm3183_vm12, %v3515_v32  ;;  %v3017_v62 = vpack.c.bf16 %v2964_v16, %v2961_v53  ;;  %p4104_p13 = pnand %p4103_p6, %p4097_p9 }
 0x46a   : > { %v3050_v31 = vadd.bf16 %v3998_v41, %v3018_v44 }
 0x46b   : > { %v3049_v39 = vadd.bf16 %v3999_v28, %v3017_v62  ;;  %v3806_v0 = vpop.f32.mrb[76].mxu0 }
 0x46c   : > { %v3066_v63 = vmax.bf16 %v4188_v19, %v3050_v31  ;;  %v2976_v57 = vpop.f32.mrb[77].mxu0  ;;  %v2985_v34 = vadd.f32 %v3806_v0, %v5305_v58 }
 0x46d   : > { %v3065_v59 = vmax.bf16 %v4188_v19, %v3049_v39  ;;  %v3807_v51 = vpop.f32.mrb[78].mxu0  ;;  %v2977_v35 = vadd.f32 %v5305_v58, %v2976_v57 }
 0x46e   : > { %v3520_v33 = vcombine.low %v3066_v63, %v3066_v63  ;;  %v3521_v47 = vcombine.high %v3066_v63, %v3066_v63  ;;  %v2988_v25 = vadd.f32 %v3807_v51, %v5305_v58  ;;  %v2979_v20 = vpop.f32.mrb[79].mxu0 }
 0x46f   : > { %v3518_v49 = vcombine.low %v3065_v59, %v3065_v59  ;;  %v3519_v29 = vcombine.high %v3065_v59, %v3065_v59  ;;  %v2980_v21 = vadd.f32 %v5305_v58, %v2979_v20 }
 0x470   : > { %3206 = vst.msk [vmem:[%s5321_s1 + $0x58] sm:$0xf] %vm3183_vm12, %v3520_v33  ;;  %3207 = vst.msk [vmem:[%s5321_s1 + $0x5c] sm:$0xf] %vm3183_vm12, %v3521_v47  ;;  %v3020_v1 = vpack.c.bf16 %v2988_v25, %v2985_v34 }
 0x471   : > { %3204 = vst.msk [vmem:[%s5321_s1 + $0x50] sm:$0xf] %vm3183_vm12, %v3518_v49  ;;  %3205 = vst.msk [vmem:[%s5321_s1 + $0x54] sm:$0xf] %vm3183_vm12, %v3519_v29  ;;  %v3019_v56 = vpack.c.bf16 %v2980_v21, %v2977_v35 }
 0x472   : > { %v3052_v10 = vadd.bf16 %v4000_v45, %v3020_v1 }
 0x473   : > { %v3051_v55 = vadd.bf16 %v4001_v4, %v3019_v56  ;;  %v3810_v37 = vpop.f32.mrb[80].mxu0 }
 0x474   : > { %v3068_v36 = vmax.bf16 %v4188_v19, %v3052_v10  ;;  %v2992_v6 = vpop.f32.mrb[81].mxu0  ;;  %v3001_v42 = vadd.f32 %v3810_v37, %v5305_v58 }
 0x475   : > { %v3067_v27 = vmax.bf16 %v4188_v19, %v3051_v55  ;;  %v3811_v5 = vpop.f32.mrb[82].mxu0  ;;  %v2993_v61 = vadd.f32 %v5305_v58, %v2992_v6 }
 0x476   : > { %v3524_v30 = vcombine.low %v3068_v36, %v3068_v36  ;;  %v3525_v46 = vcombine.high %v3068_v36, %v3068_v36  ;;  %v3004_v43 = vadd.f32 %v3811_v5, %v5305_v58  ;;  %v2995_v48 = vpop.f32.mrb[83].mxu0 }
 0x477   : > { %v3522_v54 = vcombine.low %v3067_v27, %v3067_v27  ;;  %v3523_v3 = vcombine.high %v3067_v27, %v3067_v27  ;;  %v2996_v24 = vadd.f32 %v5305_v58, %v2995_v48 }
 0x478   : > { %3210 = vst.msk [vmem:[%s5321_s1 + $0x68] sm:$0xf] %vm3183_vm12, %v3524_v30  ;;  %3211 = vst.msk [vmem:[%s5321_s1 + $0x6c] sm:$0xf] %vm3183_vm12, %v3525_v46  ;;  %v3022_v2 = vpack.c.bf16 %v3004_v43, %v3001_v42 }
 0x479   : > { %3208 = vst.msk [vmem:[%s5321_s1 + $0x60] sm:$0xf] %vm3183_vm12, %v3522_v54  ;;  %3209 = vst.msk [vmem:[%s5321_s1 + $0x64] sm:$0xf] %vm3183_vm12, %v3523_v3  ;;  %v3021_v9 = vpack.c.bf16 %v2996_v24, %v2993_v61 }
 0x47a   : > { %v3054_v7 = vadd.bf16 %v4002_v52, %v3022_v2 }
 0x47b   : > { %v3053_v12 = vadd.bf16 %v4003_v26, %v3021_v9 }
 0x47c   : > { %v3070_v58 = vmax.bf16 %v4188_v19, %v3054_v7 }
 0x47d   : > { %v3069_v13 = vmax.bf16 %v4188_v19, %v3053_v12 }
 0x47e   : > { %v3528_v40 = vcombine.low %v3070_v58, %v3070_v58  ;;  %v3529_v50 = vcombine.high %v3070_v58, %v3070_v58 }
 0x47f   : > { %v3526_v17 = vcombine.low %v3069_v13, %v3069_v13  ;;  %v3527_v38 = vcombine.high %v3069_v13, %v3069_v13 }
 0x480   : > { %3214 = vst.msk [vmem:[%s5321_s1 + $0x78] sm:$0xf] %vm3183_vm12, %v3528_v40  ;;  %3215 = vst.msk [vmem:[%s5321_s1 + $0x7c] sm:$0xf] %vm3183_vm12, %v3529_v50 }
 0x481   : > { %3212 = vst.msk [vmem:[%s5321_s1 + $0x70] sm:$0xf] %vm3183_vm12, %v3526_v17  ;;  %3213 = vst.msk [vmem:[%s5321_s1 + $0x74] sm:$0xf] %vm3183_vm12, %v3527_v38 }
 0x482   : > { %4107 = shalt.err (!%p4104_p13)
}
 0x483   : > { %s4108_s29 = scalar_lea.hbm %s5436_s24, 2048  ;;  %s4112_s19 = scalar_lea.hbm %s5548_s26, 4096 }
 0x484   : > { %p4109_p11 = scmp.ne.s32.totalorder %s5436_s24, %s4108_s29  ;;  %p4113_p7 = scmp.lt.u32.totalorder %s5436_s24, %s5548_s26 }
 0x485   : > { %p4114_p4 = scmp.lt.u32.totalorder %s4112_s19, %s4108_s29  ;;  %p4116_p0 = scmp.lt.u32.totalorder %s4108_s29, %s5436_s24 }
 0x486   : > { %p4110_p2 = pnand %p4109_p11, %p5549_p10 }
 0x487   : > { %p4115_p3 = por %p4114_p4, %p4113_p7 }
 0x488   : > { %p4111_p5 = pneg %p4110_p2 }
 0x489   : > { %p4117_p8 = por %p4116_p0, %p4115_p3 }
 0x48b   : > { %p4118_p9 = pnand %p4117_p8, %p4111_p5 }
 0x48d   : > { %4121 = shalt.err (!%p4118_p9)
}
 0x48e   : > { %s4194_s1 = smov 64  }
 0x48f   : > { %3889 = dma.vmem_to_hbm [thread:$0]  (%p5549_p10), %s5438_s25, 2048, %s5436_s24, %s3217_s12, %s4194_s1, %s4194_s1, %s4190_s21  }
 0x490 PF: > { %s5550_s18 = sld [smem:[#allocation13_spill]]  ;;  %s5551_s28 = sld [smem:[#allocation20_spill]] }
 0x491   : > { %s5552_s14 = sld [smem:[#allocation16_spill]] }
 0x496   : > { %s3248_s30 = sand.u32 1, %s5550_s18   ;;  %p5553_p12 = scmp.ne.s32.totalorder %s5551_s28, 0 }
 0x497   : > { %p5554_p1 = scmp.ge.s32.totalorder %s5552_s14, 2  ;;  %s3249_s22 = scalar_lea.sflag [#allocation5], %s3248_s30 }
 0x499   : > { %p3902_p6 = pnand %p5554_p1, %p5553_p12 }
 0x49b   : > { %4155 = dma.done.wait (!%p3902_p6), %s3249_s22, 2048  }
 0x49c   : > { %4157 = vsyncadd (!%p3902_p6), %s3249_s22, 4294965248  ;;  %s28_s14 = sadd.s32 1, %s5552_s14   ;;  %s5555_s15 = sld [smem:[#allocation14_spill]] }
 0x49d   : > { %p25_p13 = scmp.ge.s32.totalorder %s28_s14, 4   ;;  %s5556_s11 = sld [smem:[#allocation19_spill]] }
 0x49e   : > { %s5557_s12 = sld [smem:[#allocation15_spill]]  ;;  %s5558_s13 = sld [smem:[#allocation17_spill]] }
 0x49f   : > { %s5559_s30 = smov %s4164_s10  ;;  %27 = sbr.rel (!%p25_p13) target bundleno = 11 (0xb), region = 129 }
 0x4a2   : > { %s5560_s10 = smov %s5555_s15 }
 0x4a6   :  { %3254 = vsyncpa [#allocation4], 1 }
 0x4a7   :  { %3256 = vsyncpa [#allocation4 + $0x1], 1 }
 0x4a8   :  { %3257 = vsyncpa [#allocation7], 1 }
 0x4a9   :  { %3259 = vsyncpa [#allocation7 + $0x1], 1 }
 0x4aa   :  { %3260 = vsyncpa [#allocation5], 1 }
 0x4ab   :  { %3262 = vsyncpa [#allocation5 + $0x1], 1 }

</bundles_post_ra>
